<compile_context>
chip_gen: v6e
topology: v6e:2x2x1
jax: 0.10.0
libtpu: 0.0.40
codegen_flags: <defaults>
</compile_context>

<pallas_src>
import math
import numpy as np

import jax
import jax.numpy as jnp
from jax import lax
from jax.experimental import pallas as pl
from jax.experimental.pallas import tpu as pltpu  # noqa: F401  (TPU backend)


# ----------------------------- Pallas kernel --------------------------------

def fused_kernel(p1_ref, w1_ref, b1_ref,
                 s2_ref, w2_ref, b2_ref,
                 s3_ref, w3_ref, b3_ref,
                 wl1_ref, bl1_ref, wl2_ref, bl2_ref,
                 o_ref):
    f32 = jnp.float32
    bf16 = jnp.bfloat16

    # conv1: im2col matmul over the whole batch. (B*H1*W1, 27) @ (27, C1) + b1.
    h1 = jnp.dot(p1_ref[...], w1_ref[...], preferred_element_type=f32) + b1_ref[...]
    h1 = h1.astype(bf16)

    # conv2: 9 shifted taps.  s2[k] is a constant 0/1 row-selection matrix that
    # builds the (dy,dx) im2col tap of the VMEM-resident conv1 output (zero rows
    # encode the zero padding), so patches are constructed entirely in-kernel.
    acc2 = None
    for k in range(9):
        tap = jnp.dot(s2_ref[k], h1, preferred_element_type=f32).astype(bf16)
        part = jnp.dot(tap, w2_ref[k], preferred_element_type=f32)
        acc2 = part if acc2 is None else acc2 + part
    h2 = (acc2 + b2_ref[...]).astype(bf16)

    # conv3 + AdaptiveAvgPool2d((1,1)) fused: s3[k] = pool_matrix @ selection, so
    # each tap matmul already averages over the conv3 output spatial positions of
    # each batch element; the bias is added after the (linear) mean, equivalently.
    acc3 = None
    for k in range(9):
        tap = jnp.dot(s3_ref[k], h2, preferred_element_type=f32).astype(bf16)
        part = jnp.dot(tap, w3_ref[k], preferred_element_type=f32)
        acc3 = part if acc3 is None else acc3 + part
    pooled = (acc3 + b3_ref[...]).astype(bf16)                 # (B, C3)

    # linear1 -> Swish -> linear2 (lane-dense (B, dim) epilogue).
    h = jnp.dot(pooled, wl1_ref[...], preferred_element_type=f32) + bl1_ref[...]
    h = h * (1.0 / (1.0 + jnp.exp(-h)))                        # Swish: x * sigmoid(x)
    y = jnp.dot(h.astype(bf16), wl2_ref[...], preferred_element_type=f32) + bl2_ref[...]
    o_ref[...] = y.astype(o_ref.dtype)


# ------------------------------ host-side prep ------------------------------

def _out_hw(n):
    # output spatial size of a 3x3 / stride-2 / pad-1 conv
    return (n + 2 - 3) // 2 + 1


def _sel_matrices(hi, wi):
    """(9, Ho*Wo, Hi*Wi) 0/1 matrices: tap k = dy*3+dx of a 3x3/stride-2/pad-1 conv.
    Zero rows encode zero padding."""
    ho, wo = _out_hw(hi), _out_hw(wi)
    s = np.zeros((9, ho * wo, hi * wi), np.float32)
    for k in range(9):
        dy, dx = divmod(k, 3)
        for oy in range(ho):
            for ox in range(wo):
                iy, ix = 2 * oy + dy - 1, 2 * ox + dx - 1
                if 0 <= iy < hi and 0 <= ix < wi:
                    s[k, oy * wo + ox, iy * wi + ix] = 1.0
    return s


def _im2col_3x3_s2(x_nhwc):
    # TODO(synk): conv1 patch extraction (a zero-FLOP gather/pad/reshape on the raw
    # input) stays in XLA; Mosaic has no clean in-kernel strided-window slice of the
    # HBM input.  All FLOPs run inside the single fused Pallas kernel.
    B, H, W, C = x_nhwc.shape
    ho, wo = _out_hw(H), _out_hw(W)
    xp = jnp.pad(x_nhwc, ((0, 0), (1, 1), (1, 1), (0, 0)))
    taps = []
    for dy in range(3):
        for dx in range(3):
            taps.append(xp[:, dy:dy + 2 * ho - 1:2, dx:dx + 2 * wo - 1:2, :])
    # last-dim order = (kh, kw, cin), matching w.reshape(9*Cin, Cout) from HWIO.
    return jnp.concatenate(taps, axis=-1)          # (B, ho, wo, 9*C)


def pack_params(params, batch, height, width):
    """One-time (outside jit) repack: bf16 weights, per-tap conv weight stacks, and
    the constant block-diagonal tap-selection / pool-folded selection matrices."""
    (wc1, bc1), (wc2, bc2), (wc3, bc3), (wl1, bl1), (wl2, bl2) = params
    s1h, s1w = _out_hw(height), _out_hw(width)      # conv1 output spatial
    s2h, s2w = _out_hw(s1h), _out_hw(s1w)           # conv2 output spatial
    s3h, s3w = _out_hw(s2h), _out_hw(s2w)           # conv3 output spatial
    cin1, c1 = wc1.shape[2], wc1.shape[3]
    c2, c3 = wc2.shape[3], wc3.shape[3]
    dim = wl1.shape[1]
    bf = jnp.bfloat16

    eye = np.eye(batch, dtype=np.float32)
    sel2 = _sel_matrices(s1h, s1w)                                   # (9, s2h*s2w, s1h*s1w)
    sel2 = np.stack([np.kron(eye, sel2[k]) for k in range(9)])       # (9, B*s2h*s2w, B*s1h*s1w)
    sel3 = _sel_matrices(s2h, s2w)                                   # (9, s3h*s3w, s2h*s2w)
    pool = np.full((1, s3h * s3w), 1.0 / (s3h * s3w), np.float32)    # global-avg-pool row
    sel3p = np.stack([np.kron(eye, pool @ sel3[k]) for k in range(9)])  # (9, B, B*s2h*s2w)

    return (
        jnp.asarray(wc1).reshape(9 * cin1, c1).astype(bf),
        jnp.asarray(bc1).reshape(1, c1).astype(jnp.float32),
        jnp.asarray(sel2, dtype=bf),
        jnp.asarray(wc2).reshape(9, c1, c2).astype(bf),
        jnp.asarray(bc2).reshape(1, c2).astype(jnp.float32),
        jnp.asarray(sel3p, dtype=bf),
        jnp.asarray(wc3).reshape(9, c2, c3).astype(bf),
        jnp.asarray(bc3).reshape(1, c3).astype(jnp.float32),
        jnp.asarray(wl1).astype(bf),
        jnp.asarray(bl1).reshape(1, dim).astype(jnp.float32),
        jnp.asarray(wl2).astype(bf),
        jnp.asarray(bl2).reshape(1, dim).astype(jnp.float32),
    )


@jax.jit
def conditional_embedding_forward(x_nchw, packed):
    x = jnp.transpose(x_nchw, (0, 2, 3, 1)).astype(jnp.float32)   # NHWC
    p1 = _im2col_3x3_s2(x)
    b, ho, wo, k = p1.shape
    dim = packed[-1].shape[-1]
    # Single program, no grid: whole problem (a few tens of KB) lives in VMEM.
    return pl.pallas_call(
        fused_kernel,
        out_shape=jax.ShapeDtypeStruct((b, dim), jnp.float32),
    )(p1.reshape(b * ho * wo, k).astype(jnp.bfloat16), *packed)


# ------------------------------ pure-JAX reference --------------------------

def reference_forward(x_nchw, params):
    (wc1, bc1), (wc2, bc2), (wc3, bc3), (wl1, bl1), (wl2, bl2) = params
    x = jnp.transpose(x_nchw, (0, 2, 3, 1)).astype(jnp.float32)
    for w, b in ((wc1, bc1), (wc2, bc2), (wc3, bc3)):
        x = lax.conv_general_dilated(
            x, w, window_strides=(2, 2), padding=((1, 1), (1, 1)),
            dimension_numbers=("NHWC", "HWIO", "NHWC"),
            precision=lax.Precision.HIGHEST) + b[None, None, None, :]
    x = jnp.mean(x, axis=(1, 2))                   # AdaptiveAvgPool2d((1,1)) + flatten
    h = jnp.dot(x, wl1, precision=lax.Precision.HIGHEST) + bl1
    h = h * jax.nn.sigmoid(h)
    return jnp.dot(h, wl2, precision=lax.Precision.HIGHEST) + bl2


if __name__ == "__main__":
    # Shapes consistent with the module: d_model=128 -> channels=8, dim=64,
    # label image [B, 3, H, W] = [2, 3, 16, 16].
    d_model, dim = 128, 64
    channels = d_model // 16
    B, H, W = 2, 16, 16

    key = jax.random.PRNGKey(0)
    ks = jax.random.split(key, 11)

    def conv_w(k, cin, cout):
        return (jax.random.normal(k, (3, 3, cin, cout), jnp.float32)
                / math.sqrt(9 * cin))

    params = (
        (conv_w(ks[0], 3, channels),
         jax.random.normal(ks[1], (channels,), jnp.float32) * 0.02),
        (conv_w(ks[2], channels, channels * 2),
         jax.random.normal(ks[3], (channels * 2,), jnp.float32) * 0.02),
        (conv_w(ks[4], channels * 2, channels * 4),
         jax.random.normal(ks[5], (channels * 4,), jnp.float32) * 0.02),
        (jax.random.normal(ks[6], (channels * 4, dim), jnp.float32)
         / math.sqrt(channels * 4),
         jax.random.normal(ks[7], (dim,), jnp.float32) * 0.02),
        (jax.random.normal(ks[8], (dim, dim), jnp.float32) / math.sqrt(dim),
         jax.random.normal(ks[9], (dim,), jnp.float32) * 0.02),
    )
    x = jax.random.normal(ks[10], (B, 3, H, W), jnp.float32)

    packed = pack_params(params, B, H, W)          # one-time, outside the jitted path
    out = jax.block_until_ready(conditional_embedding_forward(x, packed))
    ref = reference_forward(x, params)

    assert out.shape == (B, dim)
    # bf16 operands with f32 accumulation -> looser tolerance than the f32 version.
    assert jnp.allclose(out, ref, atol=2e-2, rtol=2e-2), \
        float(jnp.max(jnp.abs(out - ref)))
    print("KERNEL_OK")
</pallas_src>

<mosaic_0001>
module attributes {stable_mosaic.version = 11 : i64} {
  func.func @fused_kernel(%arg0: memref<128x27xbf16, #tpu.memory_space<vmem>>, %arg1: memref<27x8xbf16, #tpu.memory_space<vmem>>, %arg2: memref<1x8xf32, #tpu.memory_space<vmem>>, %arg3: memref<9x32x128xbf16, #tpu.memory_space<vmem>>, %arg4: memref<9x8x16xbf16, #tpu.memory_space<vmem>>, %arg5: memref<1x16xf32, #tpu.memory_space<vmem>>, %arg6: memref<9x2x32xbf16, #tpu.memory_space<vmem>>, %arg7: memref<9x16x32xbf16, #tpu.memory_space<vmem>>, %arg8: memref<1x32xf32, #tpu.memory_space<vmem>>, %arg9: memref<32x64xbf16, #tpu.memory_space<vmem>>, %arg10: memref<1x64xf32, #tpu.memory_space<vmem>>, %arg11: memref<64x64xbf16, #tpu.memory_space<vmem>>, %arg12: memref<1x64xf32, #tpu.memory_space<vmem>>, %arg13: memref<2x64xf32, #tpu.memory_space<vmem>>) attributes {dimension_semantics = [], scalar_prefetch = 0 : i64, scratch_operands = 0 : i64, tpu.core_type = #tpu.core_type<tc>} {
    %c0 = arith.constant 0 : index
    %c0_0 = arith.constant 0 : index
    %0 = vector.load %arg0[%c0, %c0_0] : memref<128x27xbf16, #tpu.memory_space<vmem>>, vector<128x27xbf16>
    %c0_1 = arith.constant 0 : index
    %c0_2 = arith.constant 0 : index
    %1 = vector.load %arg1[%c0_1, %c0_2] : memref<27x8xbf16, #tpu.memory_space<vmem>>, vector<27x8xbf16>
    %cst = arith.constant dense<0.000000e+00> : vector<128x8xf32>
    %2 = tpu.matmul %0, %1, %cst {dimension_numbers = #tpu.dot_dimension_numbers<[1], [0], [0], [1], [0, 0, 1, 1], [], []>} : vector<128x27xbf16>, vector<27x8xbf16>, vector<128x8xf32> -> vector<128x8xf32>
    %c0_3 = arith.constant 0 : index
    %c0_4 = arith.constant 0 : index
    %3 = vector.load %arg2[%c0_3, %c0_4] : memref<1x8xf32, #tpu.memory_space<vmem>>, vector<1x8xf32>
    %4 = vector.broadcast %3 : vector<1x8xf32> to vector<128x8xf32>
    %5 = arith.addf %2, %4 : vector<128x8xf32>
    %6 = arith.truncf %5 : vector<128x8xf32> to vector<128x8xbf16>
    %c0_5 = arith.constant 0 : index
    %c0_6 = arith.constant 0 : index
    %c0_7 = arith.constant 0 : index
    %7 = vector.load %arg3[%c0_5, %c0_6, %c0_7] : memref<9x32x128xbf16, #tpu.memory_space<vmem>>, vector<1x32x128xbf16>
    %8 = vector.shape_cast %7 : vector<1x32x128xbf16> to vector<32x128xbf16>
    %cst_8 = arith.constant dense<0.000000e+00> : vector<32x8xf32>
    %9 = tpu.matmul %8, %6, %cst_8 {dimension_numbers = #tpu.dot_dimension_numbers<[1], [0], [0], [1], [0, 0, 1, 1], [], []>} : vector<32x128xbf16>, vector<128x8xbf16>, vector<32x8xf32> -> vector<32x8xf32>
    %10 = arith.truncf %9 : vector<32x8xf32> to vector<32x8xbf16>
    %c0_9 = arith.constant 0 : index
    %c0_10 = arith.constant 0 : index
    %c0_11 = arith.constant 0 : index
    %11 = vector.load %arg4[%c0_9, %c0_10, %c0_11] : memref<9x8x16xbf16, #tpu.memory_space<vmem>>, vector<1x8x16xbf16>
    %12 = vector.shape_cast %11 : vector<1x8x16xbf16> to vector<8x16xbf16>
    %cst_12 = arith.constant dense<0.000000e+00> : vector<32x16xf32>
    %13 = tpu.matmul %10, %12, %cst_12 {dimension_numbers = #tpu.dot_dimension_numbers<[1], [0], [0], [1], [0, 0, 1, 1], [], []>} : vector<32x8xbf16>, vector<8x16xbf16>, vector<32x16xf32> -> vector<32x16xf32>
    %c1 = arith.constant 1 : index
    %c0_13 = arith.constant 0 : index
    %c0_14 = arith.constant 0 : index
    %14 = vector.load %arg3[%c1, %c0_13, %c0_14] : memref<9x32x128xbf16, #tpu.memory_space<vmem>>, vector<1x32x128xbf16>
    %15 = vector.shape_cast %14 : vector<1x32x128xbf16> to vector<32x128xbf16>
    %cst_15 = arith.constant dense<0.000000e+00> : vector<32x8xf32>
    %16 = tpu.matmul %15, %6, %cst_15 {dimension_numbers = #tpu.dot_dimension_numbers<[1], [0], [0], [1], [0, 0, 1, 1], [], []>} : vector<32x128xbf16>, vector<128x8xbf16>, vector<32x8xf32> -> vector<32x8xf32>
    %17 = arith.truncf %16 : vector<32x8xf32> to vector<32x8xbf16>
    %c1_16 = arith.constant 1 : index
    %c0_17 = arith.constant 0 : index
    %c0_18 = arith.constant 0 : index
    %18 = vector.load %arg4[%c1_16, %c0_17, %c0_18] : memref<9x8x16xbf16, #tpu.memory_space<vmem>>, vector<1x8x16xbf16>
    %19 = vector.shape_cast %18 : vector<1x8x16xbf16> to vector<8x16xbf16>
    %cst_19 = arith.constant dense<0.000000e+00> : vector<32x16xf32>
    %20 = tpu.matmul %17, %19, %cst_19 {dimension_numbers = #tpu.dot_dimension_numbers<[1], [0], [0], [1], [0, 0, 1, 1], [], []>} : vector<32x8xbf16>, vector<8x16xbf16>, vector<32x16xf32> -> vector<32x16xf32>
    %21 = arith.addf %13, %20 : vector<32x16xf32>
    %c2 = arith.constant 2 : index
    %c0_20 = arith.constant 0 : index
    %c0_21 = arith.constant 0 : index
    %22 = vector.load %arg3[%c2, %c0_20, %c0_21] : memref<9x32x128xbf16, #tpu.memory_space<vmem>>, vector<1x32x128xbf16>
    %23 = vector.shape_cast %22 : vector<1x32x128xbf16> to vector<32x128xbf16>
    %cst_22 = arith.constant dense<0.000000e+00> : vector<32x8xf32>
    %24 = tpu.matmul %23, %6, %cst_22 {dimension_numbers = #tpu.dot_dimension_numbers<[1], [0], [0], [1], [0, 0, 1, 1], [], []>} : vector<32x128xbf16>, vector<128x8xbf16>, vector<32x8xf32> -> vector<32x8xf32>
    %25 = arith.truncf %24 : vector<32x8xf32> to vector<32x8xbf16>
    %c2_23 = arith.constant 2 : index
    %c0_24 = arith.constant 0 : index
    %c0_25 = arith.constant 0 : index
    %26 = vector.load %arg4[%c2_23, %c0_24, %c0_25] : memref<9x8x16xbf16, #tpu.memory_space<vmem>>, vector<1x8x16xbf16>
    %27 = vector.shape_cast %26 : vector<1x8x16xbf16> to vector<8x16xbf16>
    %cst_26 = arith.constant dense<0.000000e+00> : vector<32x16xf32>
    %28 = tpu.matmul %25, %27, %cst_26 {dimension_numbers = #tpu.dot_dimension_numbers<[1], [0], [0], [1], [0, 0, 1, 1], [], []>} : vector<32x8xbf16>, vector<8x16xbf16>, vector<32x16xf32> -> vector<32x16xf32>
    %29 = arith.addf %21, %28 : vector<32x16xf32>
    %c3 = arith.constant 3 : index
    %c0_27 = arith.constant 0 : index
    %c0_28 = arith.constant 0 : index
    %30 = vector.load %arg3[%c3, %c0_27, %c0_28] : memref<9x32x128xbf16, #tpu.memory_space<vmem>>, vector<1x32x128xbf16>
    %31 = vector.shape_cast %30 : vector<1x32x128xbf16> to vector<32x128xbf16>
    %cst_29 = arith.constant dense<0.000000e+00> : vector<32x8xf32>
    %32 = tpu.matmul %31, %6, %cst_29 {dimension_numbers = #tpu.dot_dimension_numbers<[1], [0], [0], [1], [0, 0, 1, 1], [], []>} : vector<32x128xbf16>, vector<128x8xbf16>, vector<32x8xf32> -> vector<32x8xf32>
    %33 = arith.truncf %32 : vector<32x8xf32> to vector<32x8xbf16>
    %c3_30 = arith.constant 3 : index
    %c0_31 = arith.constant 0 : index
    %c0_32 = arith.constant 0 : index
    %34 = vector.load %arg4[%c3_30, %c0_31, %c0_32] : memref<9x8x16xbf16, #tpu.memory_space<vmem>>, vector<1x8x16xbf16>
    %35 = vector.shape_cast %34 : vector<1x8x16xbf16> to vector<8x16xbf16>
    %cst_33 = arith.constant dense<0.000000e+00> : vector<32x16xf32>
    %36 = tpu.matmul %33, %35, %cst_33 {dimension_numbers = #tpu.dot_dimension_numbers<[1], [0], [0], [1], [0, 0, 1, 1], [], []>} : vector<32x8xbf16>, vector<8x16xbf16>, vector<32x16xf32> -> vector<32x16xf32>
    %37 = arith.addf %29, %36 : vector<32x16xf32>
    %c4 = arith.constant 4 : index
    %c0_34 = arith.constant 0 : index
    %c0_35 = arith.constant 0 : index
    %38 = vector.load %arg3[%c4, %c0_34, %c0_35] : memref<9x32x128xbf16, #tpu.memory_space<vmem>>, vector<1x32x128xbf16>
    %39 = vector.shape_cast %38 : vector<1x32x128xbf16> to vector<32x128xbf16>
    %cst_36 = arith.constant dense<0.000000e+00> : vector<32x8xf32>
    %40 = tpu.matmul %39, %6, %cst_36 {dimension_numbers = #tpu.dot_dimension_numbers<[1], [0], [0], [1], [0, 0, 1, 1], [], []>} : vector<32x128xbf16>, vector<128x8xbf16>, vector<32x8xf32> -> vector<32x8xf32>
    %41 = arith.truncf %40 : vector<32x8xf32> to vector<32x8xbf16>
    %c4_37 = arith.constant 4 : index
    %c0_38 = arith.constant 0 : index
    %c0_39 = arith.constant 0 : index
    %42 = vector.load %arg4[%c4_37, %c0_38, %c0_39] : memref<9x8x16xbf16, #tpu.memory_space<vmem>>, vector<1x8x16xbf16>
    %43 = vector.shape_cast %42 : vector<1x8x16xbf16> to vector<8x16xbf16>
    %cst_40 = arith.constant dense<0.000000e+00> : vector<32x16xf32>
    %44 = tpu.matmul %41, %43, %cst_40 {dimension_numbers = #tpu.dot_dimension_numbers<[1], [0], [0], [1], [0, 0, 1, 1], [], []>} : vector<32x8xbf16>, vector<8x16xbf16>, vector<32x16xf32> -> vector<32x16xf32>
    %45 = arith.addf %37, %44 : vector<32x16xf32>
    %c5 = arith.constant 5 : index
    %c0_41 = arith.constant 0 : index
    %c0_42 = arith.constant 0 : index
    %46 = vector.load %arg3[%c5, %c0_41, %c0_42] : memref<9x32x128xbf16, #tpu.memory_space<vmem>>, vector<1x32x128xbf16>
    %47 = vector.shape_cast %46 : vector<1x32x128xbf16> to vector<32x128xbf16>
    %cst_43 = arith.constant dense<0.000000e+00> : vector<32x8xf32>
    %48 = tpu.matmul %47, %6, %cst_43 {dimension_numbers = #tpu.dot_dimension_numbers<[1], [0], [0], [1], [0, 0, 1, 1], [], []>} : vector<32x128xbf16>, vector<128x8xbf16>, vector<32x8xf32> -> vector<32x8xf32>
    %49 = arith.truncf %48 : vector<32x8xf32> to vector<32x8xbf16>
    %c5_44 = arith.constant 5 : index
    %c0_45 = arith.constant 0 : index
    %c0_46 = arith.constant 0 : index
    %50 = vector.load %arg4[%c5_44, %c0_45, %c0_46] : memref<9x8x16xbf16, #tpu.memory_space<vmem>>, vector<1x8x16xbf16>
    %51 = vector.shape_cast %50 : vector<1x8x16xbf16> to vector<8x16xbf16>
    %cst_47 = arith.constant dense<0.000000e+00> : vector<32x16xf32>
    %52 = tpu.matmul %49, %51, %cst_47 {dimension_numbers = #tpu.dot_dimension_numbers<[1], [0], [0], [1], [0, 0, 1, 1], [], []>} : vector<32x8xbf16>, vector<8x16xbf16>, vector<32x16xf32> -> vector<32x16xf32>
    %53 = arith.addf %45, %52 : vector<32x16xf32>
    %c6 = arith.constant 6 : index
    %c0_48 = arith.constant 0 : index
    %c0_49 = arith.constant 0 : index
    %54 = vector.load %arg3[%c6, %c0_48, %c0_49] : memref<9x32x128xbf16, #tpu.memory_space<vmem>>, vector<1x32x128xbf16>
    %55 = vector.shape_cast %54 : vector<1x32x128xbf16> to vector<32x128xbf16>
    %cst_50 = arith.constant dense<0.000000e+00> : vector<32x8xf32>
    %56 = tpu.matmul %55, %6, %cst_50 {dimension_numbers = #tpu.dot_dimension_numbers<[1], [0], [0], [1], [0, 0, 1, 1], [], []>} : vector<32x128xbf16>, vector<128x8xbf16>, vector<32x8xf32> -> vector<32x8xf32>
    %57 = arith.truncf %56 : vector<32x8xf32> to vector<32x8xbf16>
    %c6_51 = arith.constant 6 : index
    %c0_52 = arith.constant 0 : index
    %c0_53 = arith.constant 0 : index
    %58 = vector.load %arg4[%c6_51, %c0_52, %c0_53] : memref<9x8x16xbf16, #tpu.memory_space<vmem>>, vector<1x8x16xbf16>
    %59 = vector.shape_cast %58 : vector<1x8x16xbf16> to vector<8x16xbf16>
    %cst_54 = arith.constant dense<0.000000e+00> : vector<32x16xf32>
    %60 = tpu.matmul %57, %59, %cst_54 {dimension_numbers = #tpu.dot_dimension_numbers<[1], [0], [0], [1], [0, 0, 1, 1], [], []>} : vector<32x8xbf16>, vector<8x16xbf16>, vector<32x16xf32> -> vector<32x16xf32>
    %61 = arith.addf %53, %60 : vector<32x16xf32>
    %c7 = arith.constant 7 : index
    %c0_55 = arith.constant 0 : index
    %c0_56 = arith.constant 0 : index
    %62 = vector.load %arg3[%c7, %c0_55, %c0_56] : memref<9x32x128xbf16, #tpu.memory_space<vmem>>, vector<1x32x128xbf16>
    %63 = vector.shape_cast %62 : vector<1x32x128xbf16> to vector<32x128xbf16>
    %cst_57 = arith.constant dense<0.000000e+00> : vector<32x8xf32>
    %64 = tpu.matmul %63, %6, %cst_57 {dimension_numbers = #tpu.dot_dimension_numbers<[1], [0], [0], [1], [0, 0, 1, 1], [], []>} : vector<32x128xbf16>, vector<128x8xbf16>, vector<32x8xf32> -> vector<32x8xf32>
    %65 = arith.truncf %64 : vector<32x8xf32> to vector<32x8xbf16>
    %c7_58 = arith.constant 7 : index
    %c0_59 = arith.constant 0 : index
    %c0_60 = arith.constant 0 : index
    %66 = vector.load %arg4[%c7_58, %c0_59, %c0_60] : memref<9x8x16xbf16, #tpu.memory_space<vmem>>, vector<1x8x16xbf16>
    %67 = vector.shape_cast %66 : vector<1x8x16xbf16> to vector<8x16xbf16>
    %cst_61 = arith.constant dense<0.000000e+00> : vector<32x16xf32>
    %68 = tpu.matmul %65, %67, %cst_61 {dimension_numbers = #tpu.dot_dimension_numbers<[1], [0], [0], [1], [0, 0, 1, 1], [], []>} : vector<32x8xbf16>, vector<8x16xbf16>, vector<32x16xf32> -> vector<32x16xf32>
    %69 = arith.addf %61, %68 : vector<32x16xf32>
    %c8 = arith.constant 8 : index
    %c0_62 = arith.constant 0 : index
    %c0_63 = arith.constant 0 : index
    %70 = vector.load %arg3[%c8, %c0_62, %c0_63] : memref<9x32x128xbf16, #tpu.memory_space<vmem>>, vector<1x32x128xbf16>
    %71 = vector.shape_cast %70 : vector<1x32x128xbf16> to vector<32x128xbf16>
    %cst_64 = arith.constant dense<0.000000e+00> : vector<32x8xf32>
    %72 = tpu.matmul %71, %6, %cst_64 {dimension_numbers = #tpu.dot_dimension_numbers<[1], [0], [0], [1], [0, 0, 1, 1], [], []>} : vector<32x128xbf16>, vector<128x8xbf16>, vector<32x8xf32> -> vector<32x8xf32>
    %73 = arith.truncf %72 : vector<32x8xf32> to vector<32x8xbf16>
    %c8_65 = arith.constant 8 : index
    %c0_66 = arith.constant 0 : index
    %c0_67 = arith.constant 0 : index
    %74 = vector.load %arg4[%c8_65, %c0_66, %c0_67] : memref<9x8x16xbf16, #tpu.memory_space<vmem>>, vector<1x8x16xbf16>
    %75 = vector.shape_cast %74 : vector<1x8x16xbf16> to vector<8x16xbf16>
    %cst_68 = arith.constant dense<0.000000e+00> : vector<32x16xf32>
    %76 = tpu.matmul %73, %75, %cst_68 {dimension_numbers = #tpu.dot_dimension_numbers<[1], [0], [0], [1], [0, 0, 1, 1], [], []>} : vector<32x8xbf16>, vector<8x16xbf16>, vector<32x16xf32> -> vector<32x16xf32>
    %77 = arith.addf %69, %76 : vector<32x16xf32>
    %c0_69 = arith.constant 0 : index
    %c0_70 = arith.constant 0 : index
    %78 = vector.load %arg5[%c0_69, %c0_70] : memref<1x16xf32, #tpu.memory_space<vmem>>, vector<1x16xf32>
    %79 = vector.broadcast %78 : vector<1x16xf32> to vector<32x16xf32>
    %80 = arith.addf %77, %79 : vector<32x16xf32>
    %81 = arith.truncf %80 : vector<32x16xf32> to vector<32x16xbf16>
    %c0_71 = arith.constant 0 : index
    %c0_72 = arith.constant 0 : index
    %c0_73 = arith.constant 0 : index
    %82 = vector.load %arg6[%c0_71, %c0_72, %c0_73] : memref<9x2x32xbf16, #tpu.memory_space<vmem>>, vector<1x2x32xbf16>
    %83 = vector.shape_cast %82 : vector<1x2x32xbf16> to vector<2x32xbf16>
    %cst_74 = arith.constant dense<0.000000e+00> : vector<2x16xf32>
    %84 = tpu.matmul %83, %81, %cst_74 {dimension_numbers = #tpu.dot_dimension_numbers<[1], [0], [0], [1], [0, 0, 1, 1], [], []>} : vector<2x32xbf16>, vector<32x16xbf16>, vector<2x16xf32> -> vector<2x16xf32>
    %85 = arith.truncf %84 : vector<2x16xf32> to vector<2x16xbf16>
    %c0_75 = arith.constant 0 : index
    %c0_76 = arith.constant 0 : index
    %c0_77 = arith.constant 0 : index
    %86 = vector.load %arg7[%c0_75, %c0_76, %c0_77] : memref<9x16x32xbf16, #tpu.memory_space<vmem>>, vector<1x16x32xbf16>
    %87 = vector.shape_cast %86 : vector<1x16x32xbf16> to vector<16x32xbf16>
    %cst_78 = arith.constant dense<0.000000e+00> : vector<2x32xf32>
    %88 = tpu.matmul %85, %87, %cst_78 {dimension_numbers = #tpu.dot_dimension_numbers<[1], [0], [0], [1], [0, 0, 1, 1], [], []>} : vector<2x16xbf16>, vector<16x32xbf16>, vector<2x32xf32> -> vector<2x32xf32>
    %c1_79 = arith.constant 1 : index
    %c0_80 = arith.constant 0 : index
    %c0_81 = arith.constant 0 : index
    %89 = vector.load %arg6[%c1_79, %c0_80, %c0_81] : memref<9x2x32xbf16, #tpu.memory_space<vmem>>, vector<1x2x32xbf16>
    %90 = vector.shape_cast %89 : vector<1x2x32xbf16> to vector<2x32xbf16>
    %cst_82 = arith.constant dense<0.000000e+00> : vector<2x16xf32>
    %91 = tpu.matmul %90, %81, %cst_82 {dimension_numbers = #tpu.dot_dimension_numbers<[1], [0], [0], [1], [0, 0, 1, 1], [], []>} : vector<2x32xbf16>, vector<32x16xbf16>, vector<2x16xf32> -> vector<2x16xf32>
    %92 = arith.truncf %91 : vector<2x16xf32> to vector<2x16xbf16>
    %c1_83 = arith.constant 1 : index
    %c0_84 = arith.constant 0 : index
    %c0_85 = arith.constant 0 : index
    %93 = vector.load %arg7[%c1_83, %c0_84, %c0_85] : memref<9x16x32xbf16, #tpu.memory_space<vmem>>, vector<1x16x32xbf16>
    %94 = vector.shape_cast %93 : vector<1x16x32xbf16> to vector<16x32xbf16>
    %cst_86 = arith.constant dense<0.000000e+00> : vector<2x32xf32>
    %95 = tpu.matmul %92, %94, %cst_86 {dimension_numbers = #tpu.dot_dimension_numbers<[1], [0], [0], [1], [0, 0, 1, 1], [], []>} : vector<2x16xbf16>, vector<16x32xbf16>, vector<2x32xf32> -> vector<2x32xf32>
    %96 = arith.addf %88, %95 : vector<2x32xf32>
    %c2_87 = arith.constant 2 : index
    %c0_88 = arith.constant 0 : index
    %c0_89 = arith.constant 0 : index
    %97 = vector.load %arg6[%c2_87, %c0_88, %c0_89] : memref<9x2x32xbf16, #tpu.memory_space<vmem>>, vector<1x2x32xbf16>
    %98 = vector.shape_cast %97 : vector<1x2x32xbf16> to vector<2x32xbf16>
    %cst_90 = arith.constant dense<0.000000e+00> : vector<2x16xf32>
    %99 = tpu.matmul %98, %81, %cst_90 {dimension_numbers = #tpu.dot_dimension_numbers<[1], [0], [0], [1], [0, 0, 1, 1], [], []>} : vector<2x32xbf16>, vector<32x16xbf16>, vector<2x16xf32> -> vector<2x16xf32>
    %100 = arith.truncf %99 : vector<2x16xf32> to vector<2x16xbf16>
    %c2_91 = arith.constant 2 : index
    %c0_92 = arith.constant 0 : index
    %c0_93 = arith.constant 0 : index
    %101 = vector.load %arg7[%c2_91, %c0_92, %c0_93] : memref<9x16x32xbf16, #tpu.memory_space<vmem>>, vector<1x16x32xbf16>
    %102 = vector.shape_cast %101 : vector<1x16x32xbf16> to vector<16x32xbf16>
    %cst_94 = arith.constant dense<0.000000e+00> : vector<2x32xf32>
    %103 = tpu.matmul %100, %102, %cst_94 {dimension_numbers = #tpu.dot_dimension_numbers<[1], [0], [0], [1], [0, 0, 1, 1], [], []>} : vector<2x16xbf16>, vector<16x32xbf16>, vector<2x32xf32> -> vector<2x32xf32>
    %104 = arith.addf %96, %103 : vector<2x32xf32>
    %c3_95 = arith.constant 3 : index
    %c0_96 = arith.constant 0 : index
    %c0_97 = arith.constant 0 : index
    %105 = vector.load %arg6[%c3_95, %c0_96, %c0_97] : memref<9x2x32xbf16, #tpu.memory_space<vmem>>, vector<1x2x32xbf16>
    %106 = vector.shape_cast %105 : vector<1x2x32xbf16> to vector<2x32xbf16>
    %cst_98 = arith.constant dense<0.000000e+00> : vector<2x16xf32>
    %107 = tpu.matmul %106, %81, %cst_98 {dimension_numbers = #tpu.dot_dimension_numbers<[1], [0], [0], [1], [0, 0, 1, 1], [], []>} : vector<2x32xbf16>, vector<32x16xbf16>, vector<2x16xf32> -> vector<2x16xf32>
    %108 = arith.truncf %107 : vector<2x16xf32> to vector<2x16xbf16>
    %c3_99 = arith.constant 3 : index
    %c0_100 = arith.constant 0 : index
    %c0_101 = arith.constant 0 : index
    %109 = vector.load %arg7[%c3_99, %c0_100, %c0_101] : memref<9x16x32xbf16, #tpu.memory_space<vmem>>, vector<1x16x32xbf16>
    %110 = vector.shape_cast %109 : vector<1x16x32xbf16> to vector<16x32xbf16>
    %cst_102 = arith.constant dense<0.000000e+00> : vector<2x32xf32>
    %111 = tpu.matmul %108, %110, %cst_102 {dimension_numbers = #tpu.dot_dimension_numbers<[1], [0], [0], [1], [0, 0, 1, 1], [], []>} : vector<2x16xbf16>, vector<16x32xbf16>, vector<2x32xf32> -> vector<2x32xf32>
    %112 = arith.addf %104, %111 : vector<2x32xf32>
    %c4_103 = arith.constant 4 : index
    %c0_104 = arith.constant 0 : index
    %c0_105 = arith.constant 0 : index
    %113 = vector.load %arg6[%c4_103, %c0_104, %c0_105] : memref<9x2x32xbf16, #tpu.memory_space<vmem>>, vector<1x2x32xbf16>
    %114 = vector.shape_cast %113 : vector<1x2x32xbf16> to vector<2x32xbf16>
    %cst_106 = arith.constant dense<0.000000e+00> : vector<2x16xf32>
    %115 = tpu.matmul %114, %81, %cst_106 {dimension_numbers = #tpu.dot_dimension_numbers<[1], [0], [0], [1], [0, 0, 1, 1], [], []>} : vector<2x32xbf16>, vector<32x16xbf16>, vector<2x16xf32> -> vector<2x16xf32>
    %116 = arith.truncf %115 : vector<2x16xf32> to vector<2x16xbf16>
    %c4_107 = arith.constant 4 : index
    %c0_108 = arith.constant 0 : index
    %c0_109 = arith.constant 0 : index
    %117 = vector.load %arg7[%c4_107, %c0_108, %c0_109] : memref<9x16x32xbf16, #tpu.memory_space<vmem>>, vector<1x16x32xbf16>
    %118 = vector.shape_cast %117 : vector<1x16x32xbf16> to vector<16x32xbf16>
    %cst_110 = arith.constant dense<0.000000e+00> : vector<2x32xf32>
    %119 = tpu.matmul %116, %118, %cst_110 {dimension_numbers = #tpu.dot_dimension_numbers<[1], [0], [0], [1], [0, 0, 1, 1], [], []>} : vector<2x16xbf16>, vector<16x32xbf16>, vector<2x32xf32> -> vector<2x32xf32>
    %120 = arith.addf %112, %119 : vector<2x32xf32>
    %c5_111 = arith.constant 5 : index
    %c0_112 = arith.constant 0 : index
    %c0_113 = arith.constant 0 : index
    %121 = vector.load %arg6[%c5_111, %c0_112, %c0_113] : memref<9x2x32xbf16, #tpu.memory_space<vmem>>, vector<1x2x32xbf16>
    %122 = vector.shape_cast %121 : vector<1x2x32xbf16> to vector<2x32xbf16>
    %cst_114 = arith.constant dense<0.000000e+00> : vector<2x16xf32>
    %123 = tpu.matmul %122, %81, %cst_114 {dimension_numbers = #tpu.dot_dimension_numbers<[1], [0], [0], [1], [0, 0, 1, 1], [], []>} : vector<2x32xbf16>, vector<32x16xbf16>, vector<2x16xf32> -> vector<2x16xf32>
    %124 = arith.truncf %123 : vector<2x16xf32> to vector<2x16xbf16>
    %c5_115 = arith.constant 5 : index
    %c0_116 = arith.constant 0 : index
    %c0_117 = arith.constant 0 : index
    %125 = vector.load %arg7[%c5_115, %c0_116, %c0_117] : memref<9x16x32xbf16, #tpu.memory_space<vmem>>, vector<1x16x32xbf16>
    %126 = vector.shape_cast %125 : vector<1x16x32xbf16> to vector<16x32xbf16>
    %cst_118 = arith.constant dense<0.000000e+00> : vector<2x32xf32>
    %127 = tpu.matmul %124, %126, %cst_118 {dimension_numbers = #tpu.dot_dimension_numbers<[1], [0], [0], [1], [0, 0, 1, 1], [], []>} : vector<2x16xbf16>, vector<16x32xbf16>, vector<2x32xf32> -> vector<2x32xf32>
    %128 = arith.addf %120, %127 : vector<2x32xf32>
    %c6_119 = arith.constant 6 : index
    %c0_120 = arith.constant 0 : index
    %c0_121 = arith.constant 0 : index
    %129 = vector.load %arg6[%c6_119, %c0_120, %c0_121] : memref<9x2x32xbf16, #tpu.memory_space<vmem>>, vector<1x2x32xbf16>
    %130 = vector.shape_cast %129 : vector<1x2x32xbf16> to vector<2x32xbf16>
    %cst_122 = arith.constant dense<0.000000e+00> : vector<2x16xf32>
    %131 = tpu.matmul %130, %81, %cst_122 {dimension_numbers = #tpu.dot_dimension_numbers<[1], [0], [0], [1], [0, 0, 1, 1], [], []>} : vector<2x32xbf16>, vector<32x16xbf16>, vector<2x16xf32> -> vector<2x16xf32>
    %132 = arith.truncf %131 : vector<2x16xf32> to vector<2x16xbf16>
    %c6_123 = arith.constant 6 : index
    %c0_124 = arith.constant 0 : index
    %c0_125 = arith.constant 0 : index
    %133 = vector.load %arg7[%c6_123, %c0_124, %c0_125] : memref<9x16x32xbf16, #tpu.memory_space<vmem>>, vector<1x16x32xbf16>
    %134 = vector.shape_cast %133 : vector<1x16x32xbf16> to vector<16x32xbf16>
    %cst_126 = arith.constant dense<0.000000e+00> : vector<2x32xf32>
    %135 = tpu.matmul %132, %134, %cst_126 {dimension_numbers = #tpu.dot_dimension_numbers<[1], [0], [0], [1], [0, 0, 1, 1], [], []>} : vector<2x16xbf16>, vector<16x32xbf16>, vector<2x32xf32> -> vector<2x32xf32>
    %136 = arith.addf %128, %135 : vector<2x32xf32>
    %c7_127 = arith.constant 7 : index
    %c0_128 = arith.constant 0 : index
    %c0_129 = arith.constant 0 : index
    %137 = vector.load %arg6[%c7_127, %c0_128, %c0_129] : memref<9x2x32xbf16, #tpu.memory_space<vmem>>, vector<1x2x32xbf16>
    %138 = vector.shape_cast %137 : vector<1x2x32xbf16> to vector<2x32xbf16>
    %cst_130 = arith.constant dense<0.000000e+00> : vector<2x16xf32>
    %139 = tpu.matmul %138, %81, %cst_130 {dimension_numbers = #tpu.dot_dimension_numbers<[1], [0], [0], [1], [0, 0, 1, 1], [], []>} : vector<2x32xbf16>, vector<32x16xbf16>, vector<2x16xf32> -> vector<2x16xf32>
    %140 = arith.truncf %139 : vector<2x16xf32> to vector<2x16xbf16>
    %c7_131 = arith.constant 7 : index
    %c0_132 = arith.constant 0 : index
    %c0_133 = arith.constant 0 : index
    %141 = vector.load %arg7[%c7_131, %c0_132, %c0_133] : memref<9x16x32xbf16, #tpu.memory_space<vmem>>, vector<1x16x32xbf16>
    %142 = vector.shape_cast %141 : vector<1x16x32xbf16> to vector<16x32xbf16>
    %cst_134 = arith.constant dense<0.000000e+00> : vector<2x32xf32>
    %143 = tpu.matmul %140, %142, %cst_134 {dimension_numbers = #tpu.dot_dimension_numbers<[1], [0], [0], [1], [0, 0, 1, 1], [], []>} : vector<2x16xbf16>, vector<16x32xbf16>, vector<2x32xf32> -> vector<2x32xf32>
    %144 = arith.addf %136, %143 : vector<2x32xf32>
    %c8_135 = arith.constant 8 : index
    %c0_136 = arith.constant 0 : index
    %c0_137 = arith.constant 0 : index
    %145 = vector.load %arg6[%c8_135, %c0_136, %c0_137] : memref<9x2x32xbf16, #tpu.memory_space<vmem>>, vector<1x2x32xbf16>
    %146 = vector.shape_cast %145 : vector<1x2x32xbf16> to vector<2x32xbf16>
    %cst_138 = arith.constant dense<0.000000e+00> : vector<2x16xf32>
    %147 = tpu.matmul %146, %81, %cst_138 {dimension_numbers = #tpu.dot_dimension_numbers<[1], [0], [0], [1], [0, 0, 1, 1], [], []>} : vector<2x32xbf16>, vector<32x16xbf16>, vector<2x16xf32> -> vector<2x16xf32>
    %148 = arith.truncf %147 : vector<2x16xf32> to vector<2x16xbf16>
    %c8_139 = arith.constant 8 : index
    %c0_140 = arith.constant 0 : index
    %c0_141 = arith.constant 0 : index
    %149 = vector.load %arg7[%c8_139, %c0_140, %c0_141] : memref<9x16x32xbf16, #tpu.memory_space<vmem>>, vector<1x16x32xbf16>
    %150 = vector.shape_cast %149 : vector<1x16x32xbf16> to vector<16x32xbf16>
    %cst_142 = arith.constant dense<0.000000e+00> : vector<2x32xf32>
    %151 = tpu.matmul %148, %150, %cst_142 {dimension_numbers = #tpu.dot_dimension_numbers<[1], [0], [0], [1], [0, 0, 1, 1], [], []>} : vector<2x16xbf16>, vector<16x32xbf16>, vector<2x32xf32> -> vector<2x32xf32>
    %152 = arith.addf %144, %151 : vector<2x32xf32>
    %c0_143 = arith.constant 0 : index
    %c0_144 = arith.constant 0 : index
    %153 = vector.load %arg8[%c0_143, %c0_144] : memref<1x32xf32, #tpu.memory_space<vmem>>, vector<1x32xf32>
    %154 = vector.broadcast %153 : vector<1x32xf32> to vector<2x32xf32>
    %155 = arith.addf %152, %154 : vector<2x32xf32>
    %156 = arith.truncf %155 : vector<2x32xf32> to vector<2x32xbf16>
    %c0_145 = arith.constant 0 : index
    %c0_146 = arith.constant 0 : index
    %157 = vector.load %arg9[%c0_145, %c0_146] : memref<32x64xbf16, #tpu.memory_space<vmem>>, vector<32x64xbf16>
    %cst_147 = arith.constant dense<0.000000e+00> : vector<2x64xf32>
    %158 = tpu.matmul %156, %157, %cst_147 {dimension_numbers = #tpu.dot_dimension_numbers<[1], [0], [0], [1], [0, 0, 1, 1], [], []>} : vector<2x32xbf16>, vector<32x64xbf16>, vector<2x64xf32> -> vector<2x64xf32>
    %c0_148 = arith.constant 0 : index
    %c0_149 = arith.constant 0 : index
    %159 = vector.load %arg10[%c0_148, %c0_149] : memref<1x64xf32, #tpu.memory_space<vmem>>, vector<1x64xf32>
    %160 = vector.broadcast %159 : vector<1x64xf32> to vector<2x64xf32>
    %161 = arith.addf %158, %160 : vector<2x64xf32>
    %cst_150 = arith.constant 0.000000e+00 : f32
    %162 = vector.broadcast %cst_150 : f32 to vector<2x64xf32>
    %163 = arith.subf %162, %161 : vector<2x64xf32>
    %164 = math.exp %163 : vector<2x64xf32>
    %cst_151 = arith.constant 1.000000e+00 : f32
    %165 = vector.broadcast %cst_151 : f32 to vector<2x64xf32>
    %166 = arith.addf %165, %164 : vector<2x64xf32>
    %cst_152 = arith.constant 1.000000e+00 : f32
    %167 = vector.broadcast %cst_152 : f32 to vector<2x64xf32>
    %168 = arith.divf %167, %166 : vector<2x64xf32>
    %169 = arith.mulf %161, %168 : vector<2x64xf32>
    %170 = arith.truncf %169 : vector<2x64xf32> to vector<2x64xbf16>
    %c0_153 = arith.constant 0 : index
    %c0_154 = arith.constant 0 : index
    %171 = vector.load %arg11[%c0_153, %c0_154] : memref<64x64xbf16, #tpu.memory_space<vmem>>, vector<64x64xbf16>
    %cst_155 = arith.constant dense<0.000000e+00> : vector<2x64xf32>
    %172 = tpu.matmul %170, %171, %cst_155 {dimension_numbers = #tpu.dot_dimension_numbers<[1], [0], [0], [1], [0, 0, 1, 1], [], []>} : vector<2x64xbf16>, vector<64x64xbf16>, vector<2x64xf32> -> vector<2x64xf32>
    %c0_156 = arith.constant 0 : index
    %c0_157 = arith.constant 0 : index
    %173 = vector.load %arg12[%c0_156, %c0_157] : memref<1x64xf32, #tpu.memory_space<vmem>>, vector<1x64xf32>
    %174 = vector.broadcast %173 : vector<1x64xf32> to vector<2x64xf32>
    %175 = arith.addf %172, %174 : vector<2x64xf32>
    %c0_158 = arith.constant 0 : index
    %c0_159 = arith.constant 0 : index
    %176 = vector.load %arg13[%c0_158, %c0_159] : memref<2x64xf32, #tpu.memory_space<vmem>>, vector<2x64xf32>
    tpu.vector_store %arg13[%c0_158, %c0_159], %175 {strides = array<i32>} : memref<2x64xf32, #tpu.memory_space<vmem>>, vector<2x64xf32>,
    return
  }
}

</mosaic_0001>

<bundles_post_ra>
// kernel: conditional_embedding_forward.1
= control target key start
LH: loop header
LB: loop body
LE: loop exit
PB: predicated region body
PF: predicated region fallthrough
CT: control target
= control target key end

     0   :  { %vm149_vm0 = vcmask 1044480   ;;  %vm150_vm1 = vcmask 1045504   ;;  %v3345_v1 = vmov 65535   ;;  %vm124_vm2 = vcmask 220160   ;;  %s3941_s0 = inlined_call_operand.vmem [shape: bf16[128,27], index: 0, kind: input, shape index: {}]   ;;  %s3942_s1 = inlined_call_operand.vmem [shape: bf16[27,8], index: 1, kind: input, shape index: {}]   ;;  %s3943_s2 = inlined_call_operand.vmem [shape: f32[1,8], index: 2, kind: input, shape index: {}]   ;;  %s3944_s3 = inlined_call_operand.vmem [shape: bf16[9,32,128], index: 3, kind: input, shape index: {}]   ;;  %s3945_s4 = inlined_call_operand.vmem [shape: bf16[9,8,16], index: 4, kind: input, shape index: {}]   ;;  %s3946_s5 = inlined_call_operand.vmem [shape: f32[1,16], index: 5, kind: input, shape index: {}]   ;;  %s3947_s6 = inlined_call_operand.vmem [shape: bf16[9,2,32], index: 6, kind: input, shape index: {}]   ;;  %s3948_s7 = inlined_call_operand.vmem [shape: bf16[9,16,32], index: 7, kind: input, shape index: {}]   ;;  %s3949_s8 = inlined_call_operand.vmem [shape: f32[1,32], index: 8, kind: input, shape index: {}]   ;;  %s3950_s9 = inlined_call_operand.vmem [shape: bf16[32,64], index: 9, kind: input, shape index: {}]   ;;  %s3951_s10 = inlined_call_operand.vmem [shape: f32[1,64], index: 10, kind: input, shape index: {}]   ;;  %s3952_s11 = inlined_call_operand.vmem [shape: bf16[64,64], index: 11, kind: input, shape index: {}]   ;;  %s3953_s12 = inlined_call_operand.vmem [shape: f32[1,64], index: 12, kind: input, shape index: {}]   ;;  %s3954_s13 = inlined_call_operand.hbm [shape: f32[2,64], index: 13, kind: output, shape index: {}]  }
   0x1   :  { %v3276_v0 = vld [vmem:[%s3942_s1 + $0x8] sm:$0x3f]   ;;  %v151_v2 = vsel %vm149_vm0, 4294967295, %v3345_v1  ;;  %v3278_v3 = vld [vmem:[%s3941_s0] sm:$0xff]   ;;  %v3280_v8 = vld [vmem:[%s3941_s0 + $0x10] sm:$0xff]  }
   0x2   :  { %v152_v4 = vsel %vm150_vm1, %v151_v2, 0  ;;  %v3277_v6 = vld [vmem:[%s3942_s1] sm:$0xff]   ;;  %2867 = vmatprep.mubr.msk.bf16.mxu0 %vm124_vm2, %v3278_v3  ;;  %v3279_v7 = vld [vmem:[%s3941_s0 + $0x8] sm:$0xff]   ;;  %v3281_v9 = vld [vmem:[%s3941_s0 + $0x18] sm:$0xff]  }
   0x3   :  { %v154_v5 = vand.u32 %v3276_v0, %v152_v4  ;;  %v3282_v10 = vld [vmem:[%s3941_s0 + $0x20] sm:$0xff]   ;;  %v3283_v11 = vld [vmem:[%s3941_s0 + $0x28] sm:$0xff]   ;;  %v3284_v12 = vld [vmem:[%s3941_s0 + $0x30] sm:$0xff]  }
   0x5   :  { %2863 = vmatprep.subr.bf16.mxu0 %v154_v5 }
   0x6   :  { %2864 = vmatpush3.bf16.msra.mxu0 %v154_v5 }
   0x7   :  { %2865 = vmatprep.subr.bf16.mxu0 %v3277_v6 }
   0xa   :  { %2866 = vmatpush3.bf16.msra.mxu0 %v3277_v6 }
   0xd   :  { %2868 = vmatmul.mubr.msk.bf16.vlgmr.msra.gmra.mxu0 %vm124_vm2, %v3279_v7 }
   0xe   :  { %2871 = vmatprep.mubr.msk.bf16.mxu0 %vm124_vm2, %v3280_v8 }
  0x15   :  { %2872 = vmatmul.mubr.msk.bf16.gmra.mxu0 %vm124_vm2, %v3281_v9 }
  0x16   :  { %2875 = vmatprep.mubr.msk.bf16.mxu0 %vm124_vm2, %v3282_v10 }
  0x1d   :  { %2876 = vmatmul.mubr.msk.bf16.gmra.mxu0 %vm124_vm2, %v3283_v11 }
  0x1e   :  { %2879 = vmatprep.mubr.msk.bf16.mxu0 %vm124_vm2, %v3284_v12 }
  0x1f   :  { %18 = vsyncpa [#allocation3], 0  ;;  %v3285_v13 = vld [vmem:[%s3941_s0 + $0x38] sm:$0xff]   ;;  %v3286_v14 = vld [vmem:[%s3944_s3] sm:$0xff]   ;;  %vm406_vm3 = vcmask 1043456   ;;  %vm399_vm4 = vcmask 64512  }
  0x20   :  { %v3287_v15 = vld [vmem:[%s3944_s3 + $0x10] sm:$0xff]   ;;  %2899 = vmatprep.mubr.bf16.mxu1 %v3286_v14  ;;  %v2525_v30 = vld [vmem:[%s3943_s2] ss:$0 sm:$0xff]  ;;  %v2552_v57 = vld [vmem:[%s3945_s4 + $0x4] sm:$0xf]  ;;  %vm3347_vm5 = vmmov 0  }
  0x21   :  { %v3288_v58 = vld [vmem:[%s3944_s3 + $0x8] sm:$0xff]   ;;  %v3289_v59 = vld [vmem:[%s3944_s3 + $0x18] sm:$0xff]   ;;  %v408_v60 = vsel %vm406_vm3, %v2552_v57, 0  ;;  %v328_v61 = vld [vmem:[%s3945_s4] sm:$0xf]  ;;  %vm1455_vm6 = vcmask 261120  }
  0x22   :  { %v466_v62 = vsel %vm406_vm3, %v328_v61, 0  ;;  %v2563_v63 = vld [vmem:[%s3945_s4 + $0x8] sm:$0xf]  ;;  %v2572_v14 = vld [vmem:[%s3945_s4 + $0xc] sm:$0xf]  ;;  %vm1557_vm7 = vcmask 130048  }
  0x23   :  { %v594_v12 = vsel %vm406_vm3, %v2563_v63, 0  ;;  %vm2465_vm8 = vcmask 523264   ;;  %vm2509_vm9 = vcmask 517120  }
  0x25   :  { %2880 = vmatmul.mubr.msk.bf16.gmra.mxu0 %vm124_vm2, %v3285_v13  ;;  %v3290_v13 = vld [vmem:[%s3944_s3 + $0x20] sm:$0xff]  }
  0x26   :  { %2919 = vmatprep.mubr.bf16.mxu0 %v3287_v15  ;;  %v3291_v15 = vld [vmem:[%s3944_s3 + $0x28] sm:$0xff]  }
  0xcd   :  { %v2869_v16 = vpop.f32.mrf.mxu0 }
  0xce   :  { %v199_v52 = vadd.f32 %v2869_v16, %v2525_v30  ;;  %v726_v16 = vsel %vm406_vm3, %v2572_v14, 0 }
  0xcf   :  { %v190_v17 = vpop.f32.mrf.mxu0 }
  0xd0   :  { %v191_v55 = vadd.f32 %v2525_v30, %v190_v17 }
  0xd1   :  { %v2870_v18 = vpop.f32.mrf.mxu0 }
  0xd2   :  { %v202_v50 = vadd.f32 %v2870_v18, %v2525_v30 }
  0xd3   :  { %v193_v19 = vpop.f32.mrf.mxu0 }
  0xd4   :  { %v3500_v53 = vpack.c.bf16 %v202_v50, %v199_v52  ;;  %v194_v54 = vadd.f32 %v2525_v30, %v193_v19 }
  0xd5   :  { %v2873_v20 = vpop.f32.mrf.mxu0 }
  0xd6   :  { %v215_v46 = vadd.f32 %v2873_v20, %v2525_v30  ;;  %v3506_v56 = vpack.c.bf16 %v194_v54, %v191_v55 }
  0xd7   :  { %v206_v21 = vpop.f32.mrf.mxu0 }
  0xd8   :  { %v207_v49 = vadd.f32 %v2525_v30, %v206_v21 }
  0xd9   :  { %v2874_v22 = vpop.f32.mrf.mxu0 }
  0xda   :  { %v218_v44 = vadd.f32 %v2874_v22, %v2525_v30 }
  0xdb   :  { %v209_v23 = vpop.f32.mrf.mxu0 }
  0xdc   :  { %v3488_v47 = vpack.c.bf16 %v218_v44, %v215_v46  ;;  %v210_v48 = vadd.f32 %v2525_v30, %v209_v23 }
  0xdd   :  { %v2877_v24 = vpop.f32.mrf.mxu0 }
  0xde   :  { %v231_v40 = vadd.f32 %v2877_v24, %v2525_v30  ;;  %v3494_v51 = vpack.c.bf16 %v210_v48, %v207_v49 }
  0xdf   :  { %v222_v25 = vpop.f32.mrf.mxu0 }
  0xe0   :  { %v223_v43 = vadd.f32 %v2525_v30, %v222_v25 }
  0xe1   :  { %v2878_v26 = vpop.f32.mrf.mxu0 }
  0xe2   :  { %v234_v38 = vadd.f32 %v2878_v26, %v2525_v30 }
  0xe3   :  { %v225_v27 = vpop.f32.mrf.mxu0 }
  0xe4   :  { %v3476_v41 = vpack.c.bf16 %v234_v38, %v231_v40  ;;  %v226_v42 = vadd.f32 %v2525_v30, %v225_v27 }
  0xe5   :  { %v2881_v28 = vpop.f32.mrf.mxu0 }
  0xe6   :  { %v247_v32 = vadd.f32 %v2881_v28, %v2525_v30  ;;  %v3482_v45 = vpack.c.bf16 %v226_v42, %v223_v43 }
  0xe7   :  { %v238_v29 = vpop.f32.mrf.mxu0 }
  0xe8   :  { %v239_v35 = vadd.f32 %v2525_v30, %v238_v29 }
  0xe9   :  { %v2882_v31 = vpop.f32.mrf.mxu0 }
  0xea   :  { %v250_v33 = vadd.f32 %v2882_v31, %v2525_v30 }
  0xeb   :  { %v241_v34 = vpop.f32.mrf.mxu0 }
  0xec   :  { %v3466_v36 = vpack.c.bf16 %v250_v33, %v247_v32  ;;  %v242_v37 = vadd.f32 %v2525_v30, %v241_v34  ;;  %v3292_v32 = vld [vmem:[%s3944_s3 + $0x30] sm:$0xff]  }
  0xed   :  { %v2581_v34 = vld [vmem:[%s3945_s4 + $0x10] sm:$0xf] }
  0xee   :  { %v3468_v39 = vpack.c.bf16 %v242_v37, %v239_v35  ;;  %2883 = vmatprep.subr.bf16.mxu1 %v3466_v36  ;;  %2903 = vmatprep.subr.bf16.mxu0 %v3466_v36  ;;  %v3293_v35 = vld [vmem:[%s3944_s3 + $0x38] sm:$0xff]   ;;  %v858_v37 = vsel %vm406_vm3, %v2581_v34, 0 }
  0xef   :  { %2884 = vmatpush3.bf16.msra.mxu1 %v3466_v36  ;;  %2904 = vmatpush3.bf16.msra.mxu0 %v3466_v36 }
  0xf0   :  { %2885 = vmatprep.subr.bf16.mxu1 %v3468_v39  ;;  %2905 = vmatprep.subr.bf16.mxu0 %v3468_v39 }
  0xf3   :  { %2886 = vmatpush3.bf16.msra.mxu1 %v3468_v39  ;;  %2906 = vmatpush3.bf16.msra.mxu0 %v3468_v39 }
  0xf4   :  { %2887 = vmatprep.subr.bf16.mxu1 %v3476_v41  ;;  %2907 = vmatprep.subr.bf16.mxu0 %v3476_v41 }
  0xf7   :  { %2888 = vmatpush3.bf16.msra.mxu1 %v3476_v41  ;;  %2908 = vmatpush3.bf16.msra.mxu0 %v3476_v41 }
  0xf8   :  { %2889 = vmatprep.subr.bf16.mxu1 %v3482_v45  ;;  %2909 = vmatprep.subr.bf16.mxu0 %v3482_v45 }
  0xfb   :  { %2890 = vmatpush3.bf16.msra.mxu1 %v3482_v45  ;;  %2910 = vmatpush3.bf16.msra.mxu0 %v3482_v45 }
  0xfc   :  { %2891 = vmatprep.subr.bf16.mxu1 %v3488_v47  ;;  %2911 = vmatprep.subr.bf16.mxu0 %v3488_v47 }
  0xff   :  { %2892 = vmatpush3.bf16.msra.mxu1 %v3488_v47  ;;  %2912 = vmatpush3.bf16.msra.mxu0 %v3488_v47 }
 0x100   :  { %2893 = vmatprep.subr.bf16.mxu1 %v3494_v51  ;;  %2913 = vmatprep.subr.bf16.mxu0 %v3494_v51 }
 0x103   :  { %2894 = vmatpush3.bf16.msra.mxu1 %v3494_v51  ;;  %2914 = vmatpush3.bf16.msra.mxu0 %v3494_v51 }
 0x104   :  { %2895 = vmatprep.subr.bf16.mxu1 %v3500_v53  ;;  %2915 = vmatprep.subr.bf16.mxu0 %v3500_v53 }
 0x107   :  { %2896 = vmatpush3.bf16.msra.mxu1 %v3500_v53  ;;  %2916 = vmatpush3.bf16.msra.mxu0 %v3500_v53 }
 0x108   :  { %2897 = vmatprep.subr.bf16.mxu1 %v3506_v56  ;;  %2917 = vmatprep.subr.bf16.mxu0 %v3506_v56 }
 0x10b   :  { %2898 = vmatpush3.bf16.msra.mxu1 %v3506_v56  ;;  %2918 = vmatpush3.bf16.msra.mxu0 %v3506_v56 }
 0x10c   :  { %3263 = vmatprep.subr.msk.bf16.mxu1 %vm406_vm3, %v2552_v57  ;;  %3264 = vmatprep.subr.msk.bf16.mxu0 %vm406_vm3, %v328_v61 }
 0x10e   :  { %2900 = vmatmul.mubr.bf16.vlgmr.msra.gmra.mxu1 %v3288_v58  ;;  %2920 = vmatmul.mubr.bf16.vlgmr.msra.gmra.mxu0 %v3289_v59 }
 0x10f   :  { %2924 = vmatpush3.bf16.msra.mxu1 %v408_v60  ;;  %2930 = vmatpush3.bf16.msra.mxu0 %v466_v62  ;;  %v3294_v60 = vld [vmem:[%s3944_s3 + $0x40] sm:$0xff]   ;;  %v2590_v62 = vld [vmem:[%s3945_s4 + $0x14] sm:$0xf] }
 0x110   :  { %2935 = vmatprep.subr.bf16.mxu1 %v3466_v36  ;;  %3265 = vmatprep.subr.msk.bf16.mxu0 %vm406_vm3, %v2563_v63  ;;  %v3295_v63 = vld [vmem:[%s3944_s3 + $0x48] sm:$0xff]  }
 0x1ce   :  { %v2901_v0 = vpop.f32.mrf.mxu1  ;;  %v2921_v1 = vpop.f32.mrf.mxu0 }
 0x1d0   :  { %v311_v2 = vpop.f32.mrf.mxu1  ;;  %v380_v3 = vpop.f32.mrf.mxu0 }
 0x1d2   :  { %v2902_v4 = vpop.f32.mrf.mxu1  ;;  %v2922_v5 = vpop.f32.mrf.mxu0 }
 0x1d3   :  { %v327_v6 = vpack.c.bf16 %v2902_v4, %v2901_v0  ;;  %v396_v11 = vpack.c.bf16 %v2922_v5, %v2921_v1  ;;  %v990_v0 = vsel %vm406_vm3, %v2590_v62, 0 }
 0x1d4   :  { %v314_v7 = vpop.f32.mrf.mxu1  ;;  %v383_v8 = vpop.f32.mrf.mxu0 }
 0x1d5   :  { %v326_v9 = vpack.c.bf16 %v314_v7, %v311_v2  ;;  %v395_v10 = vpack.c.bf16 %v383_v8, %v380_v3 }
 0x1d7   :  { %2925 = vmatprep.mubr.msk.bf16.mxu1 %vm399_vm4, %v395_v10  ;;  %2931 = vmatprep.mubr.msk.bf16.mxu0 %vm399_vm4, %v326_v9 }
 0x1d8   :  { %2926 = vmatmul.mubr.msk.bf16.vlgmr.msra.gmra.mxu1 %vm399_vm4, %v396_v11  ;;  %2932 = vmatmul.mubr.msk.bf16.vlgmr.msra.gmra.mxu0 %vm399_vm4, %v327_v6 }
 0x1d9   :  { %2936 = vmatpush3.bf16.msra.mxu1 %v3466_v36  ;;  %2956 = vmatpush3.bf16.msra.mxu0 %v594_v12 }
 0x1da   :  { %2937 = vmatprep.subr.bf16.mxu1 %v3468_v39  ;;  %2961 = vmatprep.subr.bf16.mxu0 %v3466_v36 }
 0x1db   :  { %2951 = vmatprep.mubr.bf16.mxu1 %v3290_v13 }
 0x1dd   :  { %2938 = vmatpush3.bf16.msra.mxu1 %v3468_v39 }
 0x1de   :  { %2939 = vmatprep.subr.bf16.mxu1 %v3476_v41 }
 0x1e1   :  { %2940 = vmatpush3.bf16.msra.mxu1 %v3476_v41 }
 0x1e2   :  { %2941 = vmatprep.subr.bf16.mxu1 %v3482_v45 }
 0x1e5   :  { %2942 = vmatpush3.bf16.msra.mxu1 %v3482_v45 }
 0x1e6   :  { %2943 = vmatprep.subr.bf16.mxu1 %v3488_v47 }
 0x1e9   :  { %2944 = vmatpush3.bf16.msra.mxu1 %v3488_v47 }
 0x1ea   :  { %2945 = vmatprep.subr.bf16.mxu1 %v3494_v51 }
 0x1ed   :  { %2946 = vmatpush3.bf16.msra.mxu1 %v3494_v51 }
 0x1ee   :  { %2947 = vmatprep.subr.bf16.mxu1 %v3500_v53 }
 0x1f1   :  { %2948 = vmatpush3.bf16.msra.mxu1 %v3500_v53 }
 0x1f2   :  { %2949 = vmatprep.subr.bf16.mxu1 %v3506_v56 }
 0x1f5   :  { %2950 = vmatpush3.bf16.msra.mxu1 %v3506_v56 }
 0x1f6   :  { %3266 = vmatprep.subr.msk.bf16.mxu1 %vm406_vm3, %v2572_v14  ;;  %v3296_v14 = vld [vmem:[%s3944_s3 + $0x50] sm:$0xff]  }
 0x1f8   :  { %2952 = vmatmul.mubr.bf16.vlgmr.msra.gmra.mxu1 %v3291_v15 }
 0x1f9   :  { %2982 = vmatpush3.bf16.msra.mxu1 %v726_v16  ;;  %v2599_v16 = vld [vmem:[%s3945_s4 + $0x18] sm:$0xf] }
 0x1fa   :  { %2987 = vmatprep.subr.bf16.mxu1 %v3466_v36 }
 0x298   :  { %v2927_v17 = vpop.f32.mrf.mxu1  ;;  %v2933_v18 = vpop.f32.mrf.mxu0 }
 0x299   :  { %v511_v19 = vadd.f32 %v2933_v18, %v2927_v17  ;;  %v3297_v17 = vld [vmem:[%s3944_s3 + $0x58] sm:$0xff]   ;;  %v1122_v18 = vsel %vm406_vm3, %v2599_v16, 0 }
 0x29a   :  { %v444_v20 = vpop.f32.mrf.mxu1  ;;  %v502_v21 = vpop.f32.mrf.mxu0 }
 0x29b   :  { %v503_v22 = vadd.f32 %v502_v21, %v444_v20 }
 0x29c   :  { %v2928_v23 = vpop.f32.mrf.mxu1  ;;  %v2934_v24 = vpop.f32.mrf.mxu0 }
 0x29d   :  { %v514_v25 = vadd.f32 %v2934_v24, %v2928_v23 }
 0x29e   :  { %v447_v26 = vpop.f32.mrf.mxu1  ;;  %v505_v38 = vpop.f32.mrf.mxu0 }
 0x29f   :  { %v506_v48 = vadd.f32 %v505_v38, %v447_v26 }
 0x2b8   :  { %v2953_v27 = vpop.f32.mrf.mxu1 }
 0x2ba   :  { %v568_v28 = vpop.f32.mrf.mxu1 }
 0x2bc   :  { %v2954_v29 = vpop.f32.mrf.mxu1 }
 0x2bd   :  { %v584_v33 = vpack.c.bf16 %v2954_v29, %v2953_v27 }
 0x2be   :  { %v571_v30 = vpop.f32.mrf.mxu1 }
 0x2bf   :  { %v583_v31 = vpack.c.bf16 %v571_v30, %v568_v28 }
 0x2c1   :  { %2957 = vmatprep.mubr.msk.bf16.mxu0 %vm399_vm4, %v583_v31 }
 0x2c2   :  { %2958 = vmatmul.mubr.msk.bf16.vlgmr.msra.gmra.mxu0 %vm399_vm4, %v584_v33 }
 0x2c3   :  { %2962 = vmatpush3.bf16.msra.mxu0 %v3466_v36  ;;  %2977 = vmatprep.mubr.bf16.mxu0 %v3292_v32  ;;  %v3298_v32 = vld [vmem:[%s3944_s3 + $0x60] sm:$0xff]  }
 0x2c4   :  { %2963 = vmatprep.subr.bf16.mxu0 %v3468_v39 }
 0x2c7   :  { %2964 = vmatpush3.bf16.msra.mxu0 %v3468_v39 }
 0x2c8   :  { %2965 = vmatprep.subr.bf16.mxu0 %v3476_v41 }
 0x2cb   :  { %2966 = vmatpush3.bf16.msra.mxu0 %v3476_v41 }
 0x2cc   :  { %2967 = vmatprep.subr.bf16.mxu0 %v3482_v45 }
 0x2cf   :  { %2968 = vmatpush3.bf16.msra.mxu0 %v3482_v45 }
 0x2d0   :  { %2969 = vmatprep.subr.bf16.mxu0 %v3488_v47 }
 0x2d3   :  { %2970 = vmatpush3.bf16.msra.mxu0 %v3488_v47 }
 0x2d4   :  { %2971 = vmatprep.subr.bf16.mxu0 %v3494_v51 }
 0x2d7   :  { %2972 = vmatpush3.bf16.msra.mxu0 %v3494_v51 }
 0x2d8   :  { %2973 = vmatprep.subr.bf16.mxu0 %v3500_v53 }
 0x2db   :  { %2974 = vmatpush3.bf16.msra.mxu0 %v3500_v53 }
 0x2dc   :  { %2975 = vmatprep.subr.bf16.mxu0 %v3506_v56 }
 0x2df   :  { %2976 = vmatpush3.bf16.msra.mxu0 %v3506_v56 }
 0x2e0   :  { %3267 = vmatprep.subr.msk.bf16.mxu0 %vm406_vm3, %v2581_v34  ;;  %v2608_v34 = vld [vmem:[%s3945_s4 + $0x1c] sm:$0xf] }
 0x2e2   :  { %2978 = vmatmul.mubr.bf16.vlgmr.msra.gmra.mxu0 %v3293_v35  ;;  %v3299_v35 = vld [vmem:[%s3944_s3 + $0x68] sm:$0xff]  }
 0x2e3   :  { %3008 = vmatpush3.bf16.msra.mxu0 %v858_v37  ;;  %v1254_v37 = vsel %vm406_vm3, %v2608_v34, 0 }
 0x2e4   :  { %3013 = vmatprep.subr.bf16.mxu0 %v3466_v36 }
 0x382   :  { %v2959_v40 = vpop.f32.mrf.mxu0 }
 0x383   :  { %v647_v42 = vadd.f32 %v2959_v40, %v511_v19 }
 0x384   :  { %v630_v43 = vpop.f32.mrf.mxu0 }
 0x385   :  { %v645_v44 = vadd.f32 %v630_v43, %v503_v22 }
 0x386   :  { %v2960_v46 = vpop.f32.mrf.mxu0 }
 0x387   :  { %v648_v49 = vadd.f32 %v2960_v46, %v514_v25 }
 0x388   :  { %v633_v50 = vpop.f32.mrf.mxu0 }
 0x389   :  { %v646_v52 = vadd.f32 %v633_v50, %v506_v48 }
 0x3a2   :  { %v2979_v54 = vpop.f32.mrf.mxu0 }
 0x3a4   :  { %v700_v55 = vpop.f32.mrf.mxu0 }
 0x3a6   :  { %v2980_v57 = vpop.f32.mrf.mxu0 }
 0x3a7   :  { %v716_v61 = vpack.c.bf16 %v2980_v57, %v2979_v54 }
 0x3a8   :  { %v703_v58 = vpop.f32.mrf.mxu0 }
 0x3a9   :  { %v715_v59 = vpack.c.bf16 %v703_v58, %v700_v55  ;;  %v3300_v58 = vld [vmem:[%s3944_s3 + $0x70] sm:$0xff]  }
 0x3ab   :  { %2983 = vmatprep.mubr.msk.bf16.mxu1 %vm399_vm4, %v715_v59 }
 0x3ac   :  { %2984 = vmatmul.mubr.msk.bf16.vlgmr.msra.gmra.mxu1 %vm399_vm4, %v716_v61 }
 0x3ad   :  { %2988 = vmatpush3.bf16.msra.mxu1 %v3466_v36  ;;  %3003 = vmatprep.mubr.bf16.mxu1 %v3294_v60  ;;  %v3301_v60 = vld [vmem:[%s3944_s3 + $0x78] sm:$0xff]  }
 0x3ae   :  { %2989 = vmatprep.subr.bf16.mxu1 %v3468_v39 }
 0x3b1   :  { %2990 = vmatpush3.bf16.msra.mxu1 %v3468_v39 }
 0x3b2   :  { %2991 = vmatprep.subr.bf16.mxu1 %v3476_v41 }
 0x3b5   :  { %2992 = vmatpush3.bf16.msra.mxu1 %v3476_v41 }
 0x3b6   :  { %2993 = vmatprep.subr.bf16.mxu1 %v3482_v45 }
 0x3b9   :  { %2994 = vmatpush3.bf16.msra.mxu1 %v3482_v45 }
 0x3ba   :  { %2995 = vmatprep.subr.bf16.mxu1 %v3488_v47 }
 0x3bd   :  { %2996 = vmatpush3.bf16.msra.mxu1 %v3488_v47 }
 0x3be   :  { %2997 = vmatprep.subr.bf16.mxu1 %v3494_v51 }
 0x3c1   :  { %2998 = vmatpush3.bf16.msra.mxu1 %v3494_v51 }
 0x3c2   :  { %2999 = vmatprep.subr.bf16.mxu1 %v3500_v53 }
 0x3c5   :  { %3000 = vmatpush3.bf16.msra.mxu1 %v3500_v53 }
 0x3c6   :  { %3001 = vmatprep.subr.bf16.mxu1 %v3506_v56 }
 0x3c9   :  { %3002 = vmatpush3.bf16.msra.mxu1 %v3506_v56 }
 0x3ca   :  { %3268 = vmatprep.subr.msk.bf16.mxu1 %vm406_vm3, %v2590_v62 }
 0x3cc   :  { %3004 = vmatmul.mubr.bf16.vlgmr.msra.gmra.mxu1 %v3295_v63 }
 0x3cd   :  { %3034 = vmatpush3.bf16.msra.mxu1 %v990_v0 }
 0x3ce   :  { %3039 = vmatprep.subr.bf16.mxu1 %v3466_v36 }
 0x46c   :  { %v2985_v1 = vpop.f32.mrf.mxu1 }
 0x46d   :  { %v779_v2 = vadd.f32 %v2985_v1, %v647_v42 }
 0x46e   :  { %v762_v3 = vpop.f32.mrf.mxu1 }
 0x46f   :  { %v777_v4 = vadd.f32 %v762_v3, %v645_v44 }
 0x470   :  { %v2986_v5 = vpop.f32.mrf.mxu1 }
 0x471   :  { %v780_v6 = vadd.f32 %v2986_v5, %v648_v49 }
 0x472   :  { %v765_v7 = vpop.f32.mrf.mxu1 }
 0x473   :  { %v778_v8 = vadd.f32 %v765_v7, %v646_v52 }
 0x48c   :  { %v3005_v9 = vpop.f32.mrf.mxu1 }
 0x48e   :  { %v832_v10 = vpop.f32.mrf.mxu1 }
 0x490   :  { %v3006_v11 = vpop.f32.mrf.mxu1 }
 0x491   :  { %v848_v15 = vpack.c.bf16 %v3006_v11, %v3005_v9 }
 0x492   :  { %v835_v12 = vpop.f32.mrf.mxu1 }
 0x493   :  { %v847_v13 = vpack.c.bf16 %v835_v12, %v832_v10  ;;  %v3302_v10 = vld [vmem:[%s3944_s3 + $0x80] sm:$0xff]  }
 0x495   :  { %3009 = vmatprep.mubr.msk.bf16.mxu0 %vm399_vm4, %v847_v13 }
 0x496   :  { %3010 = vmatmul.mubr.msk.bf16.vlgmr.msra.gmra.mxu0 %vm399_vm4, %v848_v15 }
 0x497   :  { %3014 = vmatpush3.bf16.msra.mxu0 %v3466_v36  ;;  %3029 = vmatprep.mubr.bf16.mxu0 %v3296_v14 }
 0x498   :  { %3015 = vmatprep.subr.bf16.mxu0 %v3468_v39 }
 0x49b   :  { %3016 = vmatpush3.bf16.msra.mxu0 %v3468_v39 }
 0x49c   :  { %3017 = vmatprep.subr.bf16.mxu0 %v3476_v41 }
 0x49f   :  { %3018 = vmatpush3.bf16.msra.mxu0 %v3476_v41 }
 0x4a0   :  { %3019 = vmatprep.subr.bf16.mxu0 %v3482_v45 }
 0x4a3   :  { %3020 = vmatpush3.bf16.msra.mxu0 %v3482_v45 }
 0x4a4   :  { %3021 = vmatprep.subr.bf16.mxu0 %v3488_v47 }
 0x4a7   :  { %3022 = vmatpush3.bf16.msra.mxu0 %v3488_v47 }
 0x4a8   :  { %3023 = vmatprep.subr.bf16.mxu0 %v3494_v51 }
 0x4ab   :  { %3024 = vmatpush3.bf16.msra.mxu0 %v3494_v51 }
 0x4ac   :  { %3025 = vmatprep.subr.bf16.mxu0 %v3500_v53 }
 0x4af   :  { %3026 = vmatpush3.bf16.msra.mxu0 %v3500_v53 }
 0x4b0   :  { %3027 = vmatprep.subr.bf16.mxu0 %v3506_v56 }
 0x4b3   :  { %3028 = vmatpush3.bf16.msra.mxu0 %v3506_v56 }
 0x4b4   :  { %3269 = vmatprep.subr.msk.bf16.mxu0 %vm406_vm3, %v2599_v16 }
 0x4b6   :  { %3030 = vmatmul.mubr.bf16.vlgmr.msra.gmra.mxu0 %v3297_v17 }
 0x4b7   :  { %3060 = vmatpush3.bf16.msra.mxu0 %v1122_v18 }
 0x4b8   :  { %3065 = vmatprep.subr.bf16.mxu0 %v3466_v36 }
 0x556   :  { %v3011_v19 = vpop.f32.mrf.mxu0 }
 0x557   :  { %v911_v20 = vadd.f32 %v3011_v19, %v779_v2 }
 0x558   :  { %v894_v21 = vpop.f32.mrf.mxu0 }
 0x559   :  { %v909_v22 = vadd.f32 %v894_v21, %v777_v4  ;;  %v3346_v21 = vmov 0.0  }
 0x55a   :  { %v3012_v23 = vpop.f32.mrf.mxu0 }
 0x55b   :  { %v912_v24 = vadd.f32 %v3012_v23, %v780_v6 }
 0x55c   :  { %v897_v25 = vpop.f32.mrf.mxu0 }
 0x55d   :  { %v910_v26 = vadd.f32 %v897_v25, %v778_v8  ;;  %v2620_v25 = vld [vmem:[%s3946_s5] ss:$0 sm:$0xff] }
 0x576   :  { %v3031_v27 = vpop.f32.mrf.mxu0 }
 0x578   :  { %v964_v28 = vpop.f32.mrf.mxu0 }
 0x57a   :  { %v3032_v29 = vpop.f32.mrf.mxu0 }
 0x57b   :  { %v980_v33 = vpack.c.bf16 %v3032_v29, %v3031_v27 }
 0x57c   :  { %v967_v30 = vpop.f32.mrf.mxu0 }
 0x57d   :  { %v979_v31 = vpack.c.bf16 %v967_v30, %v964_v28 }
 0x57f   :  { %3035 = vmatprep.mubr.msk.bf16.mxu1 %vm399_vm4, %v979_v31 }
 0x580   :  { %3036 = vmatmul.mubr.msk.bf16.vlgmr.msra.gmra.mxu1 %vm399_vm4, %v980_v33 }
 0x581   :  { %3040 = vmatpush3.bf16.msra.mxu1 %v3466_v36  ;;  %3055 = vmatprep.mubr.bf16.mxu1 %v3298_v32 }
 0x582   :  { %3041 = vmatprep.subr.bf16.mxu1 %v3468_v39 }
 0x585   :  { %3042 = vmatpush3.bf16.msra.mxu1 %v3468_v39 }
 0x586   :  { %3043 = vmatprep.subr.bf16.mxu1 %v3476_v41 }
 0x589   :  { %3044 = vmatpush3.bf16.msra.mxu1 %v3476_v41 }
 0x58a   :  { %3045 = vmatprep.subr.bf16.mxu1 %v3482_v45 }
 0x58d   :  { %3046 = vmatpush3.bf16.msra.mxu1 %v3482_v45 }
 0x58e   :  { %3047 = vmatprep.subr.bf16.mxu1 %v3488_v47 }
 0x591   :  { %3048 = vmatpush3.bf16.msra.mxu1 %v3488_v47 }
 0x592   :  { %3049 = vmatprep.subr.bf16.mxu1 %v3494_v51 }
 0x595   :  { %3050 = vmatpush3.bf16.msra.mxu1 %v3494_v51 }
 0x596   :  { %3051 = vmatprep.subr.bf16.mxu1 %v3500_v53 }
 0x599   :  { %3052 = vmatpush3.bf16.msra.mxu1 %v3500_v53 }
 0x59a   :  { %3053 = vmatprep.subr.bf16.mxu1 %v3506_v56 }
 0x59d   :  { %3054 = vmatpush3.bf16.msra.mxu1 %v3506_v56 }
 0x59e   :  { %3270 = vmatprep.subr.msk.bf16.mxu1 %vm406_vm3, %v2608_v34 }
 0x5a0   :  { %3056 = vmatmul.mubr.bf16.vlgmr.msra.gmra.mxu1 %v3299_v35 }
 0x5a1   :  { %3086 = vmatpush3.bf16.msra.mxu1 %v1254_v37 }
 0x5a2   :  { %3091 = vmatprep.subr.bf16.mxu1 %v3466_v36 }
 0x640   :  { %v3037_v38 = vpop.f32.mrf.mxu1 }
 0x641   :  { %v1043_v40 = vadd.f32 %v3037_v38, %v911_v20  ;;  %v1454_v38 = vld [vmem:[%s3947_s6] sm:$0x1] }
 0x642   :  { %v1026_v42 = vpop.f32.mrf.mxu1 }
 0x643   :  { %v1041_v43 = vadd.f32 %v1026_v42, %v909_v22  ;;  %v3304_v42 = vld [vmem:[%s3948_s7] sm:$0xff]  }
 0x644   :  { %v3038_v44 = vpop.f32.mrf.mxu1 }
 0x645   :  { %v1044_v46 = vadd.f32 %v3038_v44, %v912_v24 }
 0x646   :  { %v1029_v48 = vpop.f32.mrf.mxu1 }
 0x647   :  { %v1042_v49 = vadd.f32 %v1029_v48, %v910_v26 }
 0x660   :  { %v3057_v50 = vpop.f32.mrf.mxu1 }
 0x662   :  { %v1096_v52 = vpop.f32.mrf.mxu1 }
 0x664   :  { %v3058_v54 = vpop.f32.mrf.mxu1 }
 0x665   :  { %v1112_v59 = vpack.c.bf16 %v3058_v54, %v3057_v50 }
 0x666   :  { %v1099_v55 = vpop.f32.mrf.mxu1 }
 0x667   :  { %v1111_v57 = vpack.c.bf16 %v1099_v55, %v1096_v52 }
 0x669   :  { %3061 = vmatprep.mubr.msk.bf16.mxu0 %vm399_vm4, %v1111_v57 }
 0x66a   :  { %3062 = vmatmul.mubr.msk.bf16.vlgmr.msra.gmra.mxu0 %vm399_vm4, %v1112_v59  ;;  %v2630_v59 = vld [vmem:[%s3947_s6 + $0x2] sm:$0x1] }
 0x66b   :  { %3066 = vmatpush3.bf16.msra.mxu0 %v3466_v36  ;;  %3081 = vmatprep.mubr.bf16.mxu0 %v3300_v58 }
 0x66c   :  { %3067 = vmatprep.subr.bf16.mxu0 %v3468_v39 }
 0x66f   :  { %3068 = vmatpush3.bf16.msra.mxu0 %v3468_v39 }
 0x670   :  { %3069 = vmatprep.subr.bf16.mxu0 %v3476_v41 }
 0x673   :  { %3070 = vmatpush3.bf16.msra.mxu0 %v3476_v41 }
 0x674   :  { %3071 = vmatprep.subr.bf16.mxu0 %v3482_v45 }
 0x677   :  { %3072 = vmatpush3.bf16.msra.mxu0 %v3482_v45 }
 0x678   :  { %3073 = vmatprep.subr.bf16.mxu0 %v3488_v47 }
 0x67b   :  { %3074 = vmatpush3.bf16.msra.mxu0 %v3488_v47 }
 0x67c   :  { %3075 = vmatprep.subr.bf16.mxu0 %v3494_v51 }
 0x67f   :  { %3076 = vmatpush3.bf16.msra.mxu0 %v3494_v51 }
 0x680   :  { %3077 = vmatprep.subr.bf16.mxu0 %v3500_v53 }
 0x683   :  { %3078 = vmatpush3.bf16.msra.mxu0 %v3500_v53 }
 0x684   :  { %3079 = vmatprep.subr.bf16.mxu0 %v3506_v56 }
 0x687   :  { %3080 = vmatpush3.bf16.msra.mxu0 %v3506_v56 }
 0x68a   :  { %3082 = vmatmul.mubr.bf16.vlgmr.msra.gmra.mxu0 %v3301_v60  ;;  %v2636_v60 = vld [vmem:[%s3947_s6 + $0x3] sm:$0x1] }
 0x72a   :  { %v3063_v61 = vpop.f32.mrf.mxu0 }
 0x72b   :  { %v1175_v62 = vadd.f32 %v3063_v61, %v1043_v40  ;;  %v2622_v40 = vld [vmem:[%s3947_s6 + $0x1] sm:$0x1]  ;;  %v2642_v61 = vld [vmem:[%s3947_s6 + $0x4] sm:$0x1] }
 0x72c   :  { %v1158_v63 = vpop.f32.mrf.mxu0 }
 0x72d   :  { %v1173_v0 = vadd.f32 %v1158_v63, %v1041_v43  ;;  %v3305_v43 = vld [vmem:[%s3948_s7 + $0x8] sm:$0xff]   ;;  %v2654_v63 = vld [vmem:[%s3947_s6 + $0x6] sm:$0x1] }
 0x72e   :  { %v3064_v1 = vpop.f32.mrf.mxu0 }
 0x72f   :  { %v1176_v2 = vadd.f32 %v3064_v1, %v1044_v46  ;;  %v2666_v1 = vld [vmem:[%s3947_s6 + $0x8] sm:$0x1] }
 0x730   :  { %v1161_v3 = vpop.f32.mrf.mxu0 }
 0x731   :  { %v1174_v4 = vadd.f32 %v1161_v3, %v1042_v49 }
 0x74a   :  { %v3083_v5 = vpop.f32.mrf.mxu0 }
 0x74c   :  { %v1228_v6 = vpop.f32.mrf.mxu0 }
 0x74e   :  { %v3084_v7 = vpop.f32.mrf.mxu0 }
 0x74f   :  { %v1244_v11 = vpack.c.bf16 %v3084_v7, %v3083_v5 }
 0x750   :  { %v1231_v8 = vpop.f32.mrf.mxu0 }
 0x751   :  { %v1243_v9 = vpack.c.bf16 %v1231_v8, %v1228_v6 }
 0x753   :  { %3087 = vmatprep.mubr.msk.bf16.mxu1 %vm399_vm4, %v1243_v9 }
 0x754   :  { %3088 = vmatmul.mubr.msk.bf16.vlgmr.msra.gmra.mxu1 %vm399_vm4, %v1244_v11 }
 0x755   :  { %3092 = vmatpush3.bf16.msra.mxu1 %v3466_v36  ;;  %3107 = vmatprep.mubr.bf16.mxu1 %v3302_v10  ;;  %v3303_v36 = vld [vmem:[%s3944_s3 + $0x88] sm:$0xff]  }
 0x756   :  { %3093 = vmatprep.subr.bf16.mxu1 %v3468_v39 }
 0x759   :  { %3094 = vmatpush3.bf16.msra.mxu1 %v3468_v39  ;;  %v2617_v39 = vld [vmem:[%s3945_s4 + $0x20] sm:$0xf] }
 0x75a   :  { %3095 = vmatprep.subr.bf16.mxu1 %v3476_v41  ;;  %3271 = vmatprep.subr.msk.bf16.mxu0 %vm406_vm3, %v2617_v39 }
 0x75d   :  { %3096 = vmatpush3.bf16.msra.mxu1 %v3476_v41  ;;  %v1386_v41 = vsel %vm406_vm3, %v2617_v39, 0  ;;  %v3307_v39 = vld [vmem:[%s3948_s7 + $0x18] sm:$0xff]  }
 0x75e   :  { %3097 = vmatprep.subr.bf16.mxu1 %v3482_v45  ;;  %3112 = vmatpush3.bf16.msra.mxu0 %v1386_v41 }
 0x75f   :  { %3117 = vmatprep.subr.bf16.mxu0 %v3346_v21 }
 0x761   :  { %3098 = vmatpush3.bf16.msra.mxu1 %v3482_v45 }
 0x762   :  { %3099 = vmatprep.subr.bf16.mxu1 %v3488_v47 }
 0x765   :  { %3100 = vmatpush3.bf16.msra.mxu1 %v3488_v47 }
 0x766   :  { %3101 = vmatprep.subr.bf16.mxu1 %v3494_v51 }
 0x769   :  { %3102 = vmatpush3.bf16.msra.mxu1 %v3494_v51 }
 0x76a   :  { %3103 = vmatprep.subr.bf16.mxu1 %v3500_v53 }
 0x76d   :  { %3104 = vmatpush3.bf16.msra.mxu1 %v3500_v53 }
 0x76e   :  { %3105 = vmatprep.subr.bf16.mxu1 %v3506_v56 }
 0x771   :  { %3106 = vmatpush3.bf16.msra.mxu1 %v3506_v56 }
 0x772   :  { %3139 = vmatprep.subr.bf16.mxu1 %v3346_v21 }
 0x774   :  { %3108 = vmatmul.mubr.bf16.vlgmr.msra.gmra.mxu1 %v3303_v36 }
 0x775   :  { %3141 = vmatprep.mubr.msk.bf16.mxu1 %vm3347_vm5, %v3346_v21  ;;  %3140 = vmatpush3.bf16.msra.mxu1 %v3304_v42 }
 0x776   :  { %3153 = vmatprep.subr.bf16.mxu1 %v3346_v21 }
 0x814   :  { %v3089_v45 = vpop.f32.mrf.mxu1 }
 0x815   :  { %v1307_v47 = vadd.f32 %v3089_v45, %v1175_v62  ;;  %v2648_v62 = vld [vmem:[%s3947_s6 + $0x5] sm:$0x1] }
 0x816   :  { %v1290_v51 = vpop.f32.mrf.mxu1 }
 0x817   :  { %v1305_v53 = vadd.f32 %v1290_v51, %v1173_v0  ;;  %v2660_v0 = vld [vmem:[%s3947_s6 + $0x7] sm:$0x1] }
 0x818   :  { %v3090_v12 = vpop.f32.mrf.mxu1 }
 0x819   :  { %v1308_v13 = vadd.f32 %v3090_v12, %v1176_v2  ;;  %v3306_v2 = vld [vmem:[%s3948_s7 + $0x10] sm:$0xff]   ;;  %v3308_v12 = vld [vmem:[%s3948_s7 + $0x20] sm:$0xff]  }
 0x81a   :  { %v1293_v14 = vpop.f32.mrf.mxu1 }
 0x81b   :  { %v1306_v15 = vadd.f32 %v1293_v14, %v1174_v4 }
 0x834   :  { %v3109_v16 = vpop.f32.mrf.mxu1 }
 0x836   :  { %v1360_v56 = vpop.f32.mrf.mxu1 }
 0x838   :  { %v3110_v17 = vpop.f32.mrf.mxu1 }
 0x839   :  { %v1376_v20 = vpack.c.bf16 %v3110_v17, %v3109_v16  ;;  %v3309_v17 = vld [vmem:[%s3948_s7 + $0x28] sm:$0xff]  }
 0x83a   :  { %v1363_v18 = vpop.f32.mrf.mxu1 }
 0x83b   :  { %v1375_v19 = vpack.c.bf16 %v1363_v18, %v1360_v56 }
 0x83d   :  { %3113 = vmatprep.mubr.msk.bf16.mxu0 %vm399_vm4, %v1375_v19 }
 0x83e   :  { %3114 = vmatmul.mubr.msk.bf16.vlgmr.msra.gmra.mxu0 %vm399_vm4, %v1376_v20 }
 0x83f   :  { %3121 = vmatprep.mubr.msk.bf16.mxu0 %vm3347_vm5, %v3346_v21 }
 0x8fe   :  { %v3115_v22 = vpop.f32.mrf.mxu0 }
 0x8ff   :  { %v1439_v24 = vadd.f32 %v3115_v22, %v1307_v47 }
 0x900   :  { %v1422_v23 = vpop.f32.mrf.mxu0 }
 0x901   :  { %v1437_v27 = vadd.f32 %v1422_v23, %v1305_v53  ;;  %v1450_v30 = vadd.f32 %v2620_v25, %v1439_v24  ;;  %v3310_v24 = vld [vmem:[%s3948_s7 + $0x30] sm:$0xff]  }
 0x902   :  { %v3116_v26 = vpop.f32.mrf.mxu0 }
 0x903   :  { %v1440_v28 = vadd.f32 %v3116_v26, %v1308_v13  ;;  %v1448_v33 = vadd.f32 %v2620_v25, %v1437_v27 }
 0x904   :  { %v1425_v29 = vpop.f32.mrf.mxu0 }
 0x905   :  { %v1451_v31 = vadd.f32 %v2620_v25, %v1440_v28  ;;  %v1438_v32 = vadd.f32 %v1425_v29, %v1306_v15 }
 0x907   :  { %v3746_v34 = vpack.c.bf16 %v1451_v31, %v1450_v30  ;;  %v1449_v35 = vadd.f32 %v2620_v25, %v1438_v32  ;;  %v3311_v30 = vld [vmem:[%s3948_s7 + $0x38] sm:$0xff]  }
 0x909   :  { %v3748_v37 = vpack.c.bf16 %v1449_v35, %v1448_v33  ;;  %3118 = vmatpush3.bf16.msra.mxu0 %v3746_v34 }
 0x90a   :  { %3119 = vmatprep.subr.bf16.mxu0 %v3346_v21 }
 0x90d   :  { %3120 = vmatpush3.bf16.msra.mxu0 %v3748_v37 }
 0x90e   :  { %3125 = vmatprep.subr.bf16.mxu0 %v3346_v21 }
 0x910   :  { %3122 = vmatmul.mubr.msk.bf16.vlgmr.msra.gmra.mxu0 %vm1455_vm6, %v1454_v38 }
 0x911   :  { %3126 = vmatpush3.bf16.msra.mxu0 %v3746_v34  ;;  %3129 = vmatprep.mubr.msk.bf16.mxu0 %vm3347_vm5, %v3346_v21 }
 0x912   :  { %3127 = vmatprep.subr.bf16.mxu0 %v3346_v21 }
 0x915   :  { %3128 = vmatpush3.bf16.msra.mxu0 %v3748_v37 }
 0x916   :  { %3133 = vmatprep.subr.bf16.mxu0 %v3346_v21 }
 0x918   :  { %3130 = vmatmul.mubr.msk.bf16.vlgmr.msra.gmra.mxu0 %vm1455_vm6, %v2622_v40 }
 0x919   :  { %3135 = vmatprep.mubr.msk.bf16.mxu0 %vm3347_vm5, %v3346_v21  ;;  %3134 = vmatpush3.bf16.msra.mxu0 %v3305_v43 }
 0x91a   :  { %3145 = vmatprep.subr.bf16.mxu0 %v3346_v21 }
 0x9d0   :  { %v1493_v44 = vpop.f32.mrf.mxu0 }
 0x9d1   :  { %v1499_v46 = vpack.c.bf16 %v1493_v44, %v1493_v44 }
 0x9d2   :  { %v3123_v48 = vpop.f32.mrf.mxu0 }
 0x9d3   :  { %3142 = vmatmul.mubr.msk.bf16.vlgmr.msra.gmra.mxu1 %vm1557_vm7, %v1499_v46 }
 0x9d4   :  { %v1496_v49 = vpop.f32.mrf.mxu0  ;;  %3155 = vmatprep.mubr.msk.bf16.mxu1 %vm3347_vm5, %v3346_v21  ;;  %3154 = vmatpush3.bf16.msra.mxu1 %v3306_v2 }
 0x9d5   :  { %3167 = vmatprep.subr.bf16.mxu1 %v3346_v21 }
 0x9d6   :  { %v3124_v50 = vpop.f32.mrf.mxu0 }
 0x9d8   :  { %v1541_v52 = vpop.f32.mrf.mxu0 }
 0x9d9   :  { %v1547_v54 = vpack.c.bf16 %v1541_v52, %v1541_v52  ;;  %v3313_v52 = vld [vmem:[%s3950_s9 + $0x8] sm:$0xff]  }
 0x9da   :  { %v3131_v55 = vpop.f32.mrf.mxu0 }
 0x9db   :  { %3136 = vmatmul.mubr.msk.bf16.vlgmr.msra.gmra.mxu0 %vm1557_vm7, %v1547_v54  ;;  %v3314_v54 = vld [vmem:[%s3950_s9] sm:$0xff]  }
 0x9dc   :  { %3146 = vmatpush3.bf16.msra.mxu0 %v3746_v34  ;;  %v1544_v57 = vpop.f32.mrf.mxu0  ;;  %3149 = vmatprep.mubr.msk.bf16.mxu0 %vm3347_vm5, %v3346_v21 }
 0x9dd   :  { %3147 = vmatprep.subr.bf16.mxu0 %v3346_v21 }
 0x9de   :  { %v3132_v58 = vpop.f32.mrf.mxu0 }
 0x9e0   :  { %3148 = vmatpush3.bf16.msra.mxu0 %v3748_v37 }
 0x9e1   :  { %3159 = vmatprep.subr.bf16.mxu0 %v3346_v21 }
 0x9e3   :  { %3150 = vmatmul.mubr.msk.bf16.vlgmr.msra.gmra.mxu0 %vm1455_vm6, %v2630_v59 }
 0x9e4   :  { %3160 = vmatpush3.bf16.msra.mxu0 %v3746_v34  ;;  %3163 = vmatprep.mubr.msk.bf16.mxu0 %vm3347_vm5, %v3346_v21 }
 0x9e5   :  { %3161 = vmatprep.subr.bf16.mxu0 %v3346_v21 }
 0x9e8   :  { %3162 = vmatpush3.bf16.msra.mxu0 %v3748_v37 }
 0x9e9   :  { %3173 = vmatprep.subr.bf16.mxu0 %v3346_v21 }
 0x9eb   :  { %3164 = vmatmul.mubr.msk.bf16.vlgmr.msra.gmra.mxu0 %vm1455_vm6, %v2636_v60 }
 0x9ec   :  { %3174 = vmatpush3.bf16.msra.mxu0 %v3746_v34  ;;  %3177 = vmatprep.mubr.msk.bf16.mxu0 %vm3347_vm5, %v3346_v21 }
 0x9ed   :  { %3175 = vmatprep.subr.bf16.mxu0 %v3346_v21 }
 0x9f0   :  { %3176 = vmatpush3.bf16.msra.mxu0 %v3748_v37 }
 0x9f1   :  { %3187 = vmatprep.subr.bf16.mxu0 %v3346_v21 }
 0x9f3   :  { %3178 = vmatmul.mubr.msk.bf16.vlgmr.msra.gmra.mxu0 %vm1455_vm6, %v2642_v61 }
 0x9f4   :  { %3188 = vmatpush3.bf16.msra.mxu0 %v3746_v34  ;;  %3191 = vmatprep.mubr.msk.bf16.mxu0 %vm3347_vm5, %v3346_v21 }
 0x9f5   :  { %3189 = vmatprep.subr.bf16.mxu0 %v3346_v21 }
 0x9f8   :  { %3190 = vmatpush3.bf16.msra.mxu0 %v3748_v37 }
 0x9f9   :  { %3201 = vmatprep.subr.bf16.mxu0 %v3346_v21 }
 0x9fb   :  { %3192 = vmatmul.mubr.msk.bf16.vlgmr.msra.gmra.mxu0 %vm1455_vm6, %v2648_v62 }
 0x9fc   :  { %3202 = vmatpush3.bf16.msra.mxu0 %v3746_v34  ;;  %3205 = vmatprep.mubr.msk.bf16.mxu0 %vm3347_vm5, %v3346_v21 }
 0x9fd   :  { %3203 = vmatprep.subr.bf16.mxu0 %v3346_v21 }
 0xa00   :  { %3204 = vmatpush3.bf16.msra.mxu0 %v3748_v37 }
 0xa01   :  { %3215 = vmatprep.subr.bf16.mxu0 %v3346_v21 }
 0xa03   :  { %3206 = vmatmul.mubr.msk.bf16.vlgmr.msra.gmra.mxu0 %vm1455_vm6, %v2654_v63 }
 0xa04   :  { %3216 = vmatpush3.bf16.msra.mxu0 %v3746_v34  ;;  %3219 = vmatprep.mubr.msk.bf16.mxu0 %vm3347_vm5, %v3346_v21 }
 0xa05   :  { %3217 = vmatprep.subr.bf16.mxu0 %v3346_v21 }
 0xa08   :  { %3218 = vmatpush3.bf16.msra.mxu0 %v3748_v37 }
 0xa09   :  { %3229 = vmatprep.subr.bf16.mxu0 %v3346_v21 }
 0xa0b   :  { %3220 = vmatmul.mubr.msk.bf16.vlgmr.msra.gmra.mxu0 %vm1455_vm6, %v2660_v0 }
 0xa0c   :  { %3230 = vmatpush3.bf16.msra.mxu0 %v3746_v34  ;;  %3233 = vmatprep.mubr.msk.bf16.mxu0 %vm3347_vm5, %v3346_v21 }
 0xa0d   :  { %3231 = vmatprep.subr.bf16.mxu0 %v3346_v21 }
 0xa10   :  { %3232 = vmatpush3.bf16.msra.mxu0 %v3748_v37  ;;  %v3312_v37 = vld [vmem:[%s3948_s7 + $0x40] sm:$0xff]  }
 0xa11   :  { %3243 = vmatprep.subr.bf16.mxu0 %v3346_v21 }
 0xa13   :  { %3234 = vmatmul.mubr.msk.bf16.vlgmr.msra.gmra.mxu0 %vm1455_vm6, %v2666_v1 }
 0xa14   :  { %3247 = vmatprep.mubr.msk.bf16.mxu0 %vm3347_vm5, %v3346_v21  ;;  %3244 = vmatpush3.bf16.msra.mxu0 %v3313_v52 }
 0xa15   :  { %3245 = vmatprep.subr.bf16.mxu0 %v3346_v21 }
 0xa18   :  { %3246 = vmatpush3.bf16.msra.mxu0 %v3314_v54 }
 0xa93   :  { %v1644_v3 = vpop.f32.mrf.mxu1 }
 0xa95   :  { %v3143_v4 = vpop.f32.mrf.mxu1 }
 0xa97   :  { %v1647_v5 = vpop.f32.mrf.mxu1 }
 0xa99   :  { %v3144_v6 = vpop.f32.mrf.mxu1 }
 0xa9b   :  { %v1595_v7 = vpop.f32.mrf.mxu0 }
 0xa9c   :  { %v3858_v8 = vadd.f32 %v1644_v3, %v1595_v7 }
 0xa9d   :  { %v3137_v9 = vpop.f32.mrf.mxu0 }
 0xa9f   :  { %v1598_v10 = vpop.f32.mrf.mxu0 }
 0xaa1   :  { %v3138_v11 = vpop.f32.mrf.mxu0 }
 0xaa3   :  { %v1689_v36 = vpop.f32.mrf.mxu0 }
 0xaa4   :  { %v1695_v41 = vpack.c.bf16 %v1689_v36, %v1689_v36 }
 0xaa5   :  { %v3151_v45 = vpop.f32.mrf.mxu0 }
 0xaa6   :  { %3156 = vmatmul.mubr.msk.bf16.vlgmr.msra.gmra.mxu1 %vm1557_vm7, %v1695_v41 }
 0xaa7   :  { %v1692_v47 = vpop.f32.mrf.mxu0  ;;  %3168 = vmatpush3.bf16.msra.mxu1 %v3307_v39  ;;  %3169 = vmatprep.mubr.msk.bf16.mxu1 %vm3347_vm5, %v3346_v21 }
 0xaa8   :  { %3181 = vmatprep.subr.bf16.mxu1 %v3346_v21 }
 0xaa9   :  { %v3152_v51 = vpop.f32.mrf.mxu0 }
 0xaab   :  { %v1788_v53 = vpop.f32.mrf.mxu0 }
 0xaac   :  { %v1794_v13 = vpack.c.bf16 %v1788_v53, %v1788_v53 }
 0xaad   :  { %v3165_v14 = vpop.f32.mrf.mxu0 }
 0xaae   :  { %3170 = vmatmul.mubr.msk.bf16.vlgmr.msra.gmra.mxu1 %vm1557_vm7, %v1794_v13 }
 0xaaf   :  { %v1791_v15 = vpop.f32.mrf.mxu0  ;;  %3182 = vmatpush3.bf16.msra.mxu1 %v3308_v12  ;;  %3183 = vmatprep.mubr.msk.bf16.mxu1 %vm3347_vm5, %v3346_v21 }
 0xab0   :  { %3195 = vmatprep.subr.bf16.mxu1 %v3346_v21 }
 0xab1   :  { %v3166_v16 = vpop.f32.mrf.mxu0 }
 0xab3   :  { %v1887_v56 = vpop.f32.mrf.mxu0 }
 0xab4   :  { %v1893_v18 = vpack.c.bf16 %v1887_v56, %v1887_v56  ;;  %v2672_v56 = vld [vmem:[%s3949_s8] ss:$0 sm:$0xff] }
 0xab5   :  { %v3179_v19 = vpop.f32.mrf.mxu0 }
 0xab6   :  { %3184 = vmatmul.mubr.msk.bf16.vlgmr.msra.gmra.mxu1 %vm1557_vm7, %v1893_v18 }
 0xab7   :  { %v1890_v20 = vpop.f32.mrf.mxu0  ;;  %3196 = vmatpush3.bf16.msra.mxu1 %v3309_v17  ;;  %3197 = vmatprep.mubr.msk.bf16.mxu1 %vm3347_vm5, %v3346_v21 }
 0xab8   :  { %3209 = vmatprep.subr.bf16.mxu1 %v3346_v21 }
 0xab9   :  { %v3180_v22 = vpop.f32.mrf.mxu0 }
 0xabb   :  { %v1986_v23 = vpop.f32.mrf.mxu0 }
 0xabc   :  { %v1992_v25 = vpack.c.bf16 %v1986_v23, %v1986_v23  ;;  %v3315_v23 = vld [vmem:[%s3952_s11 + $0x18] sm:$0xff]  }
 0xabd   :  { %v3193_v26 = vpop.f32.mrf.mxu0 }
 0xabe   :  { %3198 = vmatmul.mubr.msk.bf16.vlgmr.msra.gmra.mxu1 %vm1557_vm7, %v1992_v25  ;;  %v3317_v25 = vld [vmem:[%s3952_s11 + $0x8] sm:$0xff]   ;;  %v3318_v26 = vld [vmem:[%s3952_s11] sm:$0xff]  }
 0xabf   :  { %v1989_v27 = vpop.f32.mrf.mxu0  ;;  %3210 = vmatpush3.bf16.msra.mxu1 %v3310_v24  ;;  %3211 = vmatprep.mubr.msk.bf16.mxu1 %vm3347_vm5, %v3346_v21  ;;  %v3316_v24 = vld [vmem:[%s3952_s11 + $0x10] sm:$0xff]  }
 0xac0   :  { %3223 = vmatprep.subr.bf16.mxu1 %v3346_v21  ;;  %v2673_v27 = vld [vmem:[%s3951_s10] ss:$0 sm:$0xff]  ;;  %s3348_s10 = smov [#allocation2]  }
 0xac1   :  { %v3194_v28 = vpop.f32.mrf.mxu0  ;;  %s2517_s24 = sshll.u32 %s3348_s10, 4  ;;  %s2518_s24 = int_to_ptr.vmem [resolvable:$true] %s2517_s24 }
 0xac2   :  { %s3323_s25 = scalar_lea.vmem %s2518_s24, 32  ;;  %p3328_p1 = scmp.lt.s32.totalorder %s2518_s24, %s2518_s24 }
 0xac3   :  { %v2085_v29 = vpop.f32.mrf.mxu0  ;;  %p3324_p0 = scmp.ne.s32.totalorder %s2518_s24, %s3323_s25  ;;  %p3329_p2 = scmp.lt.s32.totalorder %s3323_s25, %s3323_s25 }
 0xac4   :  { %v2091_v31 = vpack.c.bf16 %v2085_v29, %v2085_v29 }
 0xac5   :  { %v3207_v32 = vpop.f32.mrf.mxu0  ;;  %p3330_p3 = por %p3329_p2, %p3328_p1 }
 0xac6   :  { %3212 = vmatmul.mubr.msk.bf16.vlgmr.msra.gmra.mxu1 %vm1557_vm7, %v2091_v31 }
 0xac7   :  { %v2088_v33 = vpop.f32.mrf.mxu0  ;;  %3224 = vmatpush3.bf16.msra.mxu1 %v3311_v30  ;;  %3225 = vmatprep.mubr.msk.bf16.mxu1 %vm3347_vm5, %v3346_v21  ;;  %p3331_p4 = pnand %p3330_p3, %p3324_p0 }
 0xac8   :  { %3237 = vmatprep.subr.bf16.mxu1 %v3346_v21 }
 0xac9   :  { %v3208_v34 = vpop.f32.mrf.mxu0 }
 0xacb   :  { %v2184_v35 = vpop.f32.mrf.mxu0 }
 0xacc   :  { %v2190_v38 = vpack.c.bf16 %v2184_v35, %v2184_v35 }
 0xacd   :  { %v3221_v40 = vpop.f32.mrf.mxu0 }
 0xace   :  { %3226 = vmatmul.mubr.msk.bf16.vlgmr.msra.gmra.mxu1 %vm1557_vm7, %v2190_v38 }
 0xacf   :  { %v2187_v42 = vpop.f32.mrf.mxu0  ;;  %3238 = vmatpush3.bf16.msra.mxu1 %v3312_v37  ;;  %3239 = vmatprep.mubr.msk.bf16.mxu1 %vm3347_vm5, %v3346_v21 }
 0xad0   :  { %3251 = vmatprep.subr.bf16.mxu1 %v3346_v21  ;;  %v2677_v42 = vld [vmem:[%s3953_s12] ss:$0 sm:$0xff] }
 0xad1   :  { %v3222_v43 = vpop.f32.mrf.mxu0 }
 0xad3   :  { %v2283_v44 = vpop.f32.mrf.mxu0 }
 0xad4   :  { %v2289_v46 = vpack.c.bf16 %v2283_v44, %v2283_v44 }
 0xad5   :  { %v3235_v48 = vpop.f32.mrf.mxu0 }
 0xad6   :  { %3240 = vmatmul.mubr.msk.bf16.vlgmr.msra.gmra.mxu1 %vm1557_vm7, %v2289_v46 }
 0xad7   :  { %v2286_v49 = vpop.f32.mrf.mxu0  ;;  %3259 = vmatprep.mubr.msk.bf16.mxu1 %vm3347_vm5, %v3346_v21  ;;  %3252 = vmatpush3.bf16.msra.mxu1 %v3315_v23 }
 0xad8   :  { %3253 = vmatprep.subr.bf16.mxu1 %v3346_v21 }
 0xad9   :  { %v3236_v50 = vpop.f32.mrf.mxu0 }
 0xadb   :  { %3254 = vmatpush3.bf16.msra.mxu1 %v3316_v24 }
 0xadc   :  { %3255 = vmatprep.subr.bf16.mxu1 %v3346_v21 }
 0xadf   :  { %3256 = vmatpush3.bf16.msra.mxu1 %v3317_v25 }
 0xae0   :  { %3257 = vmatprep.subr.bf16.mxu1 %v3346_v21 }
 0xae3   :  { %3258 = vmatpush3.bf16.msra.mxu1 %v3318_v26 }
 0xb66   :  { %v1742_v55 = vpop.f32.mrf.mxu1 }
 0xb67   :  { %v1748_v36 = vadd.f32 %v1742_v55, %v3858_v8 }
 0xb68   :  { %v3157_v57 = vpop.f32.mrf.mxu1 }
 0xb6a   :  { %v1745_v58 = vpop.f32.mrf.mxu1 }
 0xb6c   :  { %v3158_v59 = vpop.f32.mrf.mxu1 }
 0xb6e   :  { %v1841_v60 = vpop.f32.mrf.mxu1 }
 0xb6f   :  { %v1847_v41 = vadd.f32 %v1841_v60, %v1748_v36 }
 0xb70   :  { %v3171_v61 = vpop.f32.mrf.mxu1 }
 0xb72   :  { %v1844_v62 = vpop.f32.mrf.mxu1 }
 0xb74   :  { %v3172_v63 = vpop.f32.mrf.mxu1 }
 0xb76   :  { %v1940_v0 = vpop.f32.mrf.mxu1 }
 0xb77   :  { %v1946_v47 = vadd.f32 %v1940_v0, %v1847_v41 }
 0xb78   :  { %v3185_v1 = vpop.f32.mrf.mxu1 }
 0xb7a   :  { %v1943_v2 = vpop.f32.mrf.mxu1 }
 0xb7c   :  { %v3186_v3 = vpop.f32.mrf.mxu1 }
 0xb7e   :  { %v2039_v4 = vpop.f32.mrf.mxu1 }
 0xb7f   :  { %v2045_v53 = vadd.f32 %v2039_v4, %v1946_v47 }
 0xb80   :  { %v3199_v5 = vpop.f32.mrf.mxu1 }
 0xb82   :  { %v2042_v6 = vpop.f32.mrf.mxu1 }
 0xb84   :  { %v3200_v7 = vpop.f32.mrf.mxu1 }
 0xb86   :  { %v2138_v9 = vpop.f32.mrf.mxu1 }
 0xb87   :  { %v2144_v13 = vadd.f32 %v2138_v9, %v2045_v53 }
 0xb88   :  { %v3213_v10 = vpop.f32.mrf.mxu1 }
 0xb8a   :  { %v2141_v11 = vpop.f32.mrf.mxu1 }
 0xb8c   :  { %v3214_v39 = vpop.f32.mrf.mxu1 }
 0xb8e   :  { %v2237_v45 = vpop.f32.mrf.mxu1 }
 0xb8f   :  { %v2243_v15 = vadd.f32 %v2237_v45, %v2144_v13 }
 0xb90   :  { %v3227_v51 = vpop.f32.mrf.mxu1 }
 0xb92   :  { %v2240_v12 = vpop.f32.mrf.mxu1 }
 0xb94   :  { %v3228_v14 = vpop.f32.mrf.mxu1 }
 0xb96   :  { %v2336_v16 = vpop.f32.mrf.mxu1 }
 0xb97   :  { %v2342_v17 = vadd.f32 %v2336_v16, %v2243_v15 }
 0xb98   :  { %v3241_v18 = vpop.f32.mrf.mxu1 }
 0xb99   :  { %v2350_v19 = vadd.f32 %v2672_v56, %v2342_v17 }
 0xb9a   :  { %v2339_v20 = vpop.f32.mrf.mxu1 }
 0xb9b   :  { %v2351_v8 = vpack.c.bf16 %v2350_v19, %v2350_v19 }
 0xb9c   :  { %v3242_v22 = vpop.f32.mrf.mxu1 }
 0xb9d   :  { %3248 = vmatmul.mubr.msk.bf16.vlgmr.msra.gmra.mxu0 %vm1455_vm6, %v2351_v8 }
 0xc5d   :  { %v2412_v28 = vpop.f32.mrf.mxu0 }
 0xc5e   :  { %v2413_v29 = vadd.f32 %v2673_v27, %v2412_v28 }
 0xc5f   :  { %v3249_v30 = vpop.f32.mrf.mxu0 }
 0xc60   :  { %v2418_v31 = vsub.f32 0.0, %v2413_v29 }
 0xc61   :  { %v2415_v32 = vpop.f32.mrf.mxu0 }
 0xc62   :  { %v2419_v33 = vmul.f32 1.442695, %v2418_v31 }
 0xc63   :  { %v3250_v34 = vpop.f32.mrf.mxu0 }
 0xc64   :  { %3319 = vpow2.f32 %v2419_v33 }
 0xc71   :  { %v3320_v35 = vpop.eup %3319 }
 0xc72   :  { %v2421_v37 = vadd.f32 1.0, %v3320_v35 }
 0xc74   :  { %3321 = vrcp.f32 %v2421_v37 }
 0xc81   :  { %v3322_v21 = vpop.eup %3321 }
 0xc82   :  { %v2424_v38 = vmul.f32 %v3322_v21, %v2413_v29 }
 0xc84   :  { %v2425_v40 = vpack.c.bf16 %v2424_v38, %v2424_v38 }
 0xc86   :  { %3260 = vmatmul.mubr.msk.bf16.vlgmr.msra.gmra.mxu1 %vm2465_vm8, %v2425_v40 }
 0xd46   :  { %v2503_v43 = vpop.f32.mrf.mxu1 }
 0xd47   :  { %v2504_v44 = vadd.f32 %v2677_v42, %v2503_v43 }
 0xd48   :  { %v3261_v46 = vpop.f32.mrf.mxu1 }
 0xd49   :  { %2510 = vst.msk [vmem:[#allocation2] sm:$0x3] %vm2509_vm9, %v2504_v44 }
 0xd4a   :  { %v2506_v48 = vpop.f32.mrf.mxu1 }
 0xd4b   :  { %3334 = shalt.err (!%p3331_p4)
}
 0xd4c   :  { %2520 = dma.vmem_to_hbm [thread:$0]  %s2518_s24, 32, %s3954_s13, [#allocation3]   ;;  %v3262_v49 = vpop.f32.mrf.mxu1 }
 0xd4d   :  { %3343 = dma.done.wait [#allocation3], 32  }
 0xd4e   :  { %3344 = vsyncadd [#allocation3], 4294967264 }
 0xd4f   :  { %2524 = vsyncpa [#allocation3], 1 }

</bundles_post_ra>
